<compile_context>
chip_gen: v7x
topology: tpu7x:2x2x1
jax: 0.10.0
libtpu: 0.0.40
codegen_flags: <defaults>
</compile_context>

<pallas_src>
import functools
import math

import jax
import jax.numpy as jnp
from jax.experimental import pallas as pl
from jax.experimental.pallas import tpu as pltpu

# ---- scaled-down ViT-L/32-style config (synthetic small shapes) -------------
PATCH = 8          # 32 in the real model
IMG = 16           # 224 in the real model
IN_CH = 1          # conv_proj replaced with Conv2d(IN_CH, hidden, ...)
HIDDEN = 32        # 1024 in ViT-L
NUM_HEADS = 2      # 16 in ViT-L
HEAD_DIM = HIDDEN // NUM_HEADS
MLP_DIM = 64       # 4096 in ViT-L
NUM_LAYERS = 2     # 24 in ViT-L
NUM_CLASSES = 16   # vit.heads.head.out_features (1000 in the real model)
FC_H1 = 32         # 1000 in the real model (first two fc layers)
FC_H2 = 16         # 500 in the real model
LN_EPS = 1e-6

_INV_SQRT2 = 1.0 / math.sqrt(2.0)
_ATTN_SCALE = 1.0 / math.sqrt(HEAD_DIM)
_NEG_BIG = -1e9    # finite mask constant (fully-masked padded rows stay NaN-free)


# -----------------------------------------------------------------------------
# in-kernel helpers
# -----------------------------------------------------------------------------
def _mdot(a, b):
    """MXU matmul: bf16 operands, f32 accumulation."""
    return jnp.dot(a.astype(jnp.bfloat16), b.astype(jnp.bfloat16),
                   preferred_element_type=jnp.float32)


def _mdot_nt(a, b):
    """a @ b.T (contract last dims): bf16 operands, f32 accumulation."""
    return jax.lax.dot_general(a.astype(jnp.bfloat16), b.astype(jnp.bfloat16),
                               (((1,), (1,)), ((), ())),
                               preferred_element_type=jnp.float32)


def _layer_norm(x, g, b):
    mu = jnp.mean(x, axis=-1, keepdims=True)
    xc = x - mu
    var = jnp.mean(xc * xc, axis=-1, keepdims=True)
    return xc * jax.lax.rsqrt(var + LN_EPS) * g + b


def _erf_approx(x):
    # Abramowitz & Stegun 7.1.26 (erf has no Mosaic lowering); reciprocal on the EUP.
    a1, a2, a3, a4, a5 = 0.254829592, -0.284496736, 1.421413741, -1.453152027, 1.061405429
    p = 0.3275911
    s = jnp.where(x >= 0.0, 1.0, -1.0)
    ax = jnp.abs(x)
    t = pl.reciprocal(1.0 + p * ax, approx=True)
    poly = ((((a5 * t + a4) * t + a3) * t + a2) * t + a1) * t
    return s * (1.0 - poly * jnp.exp(-ax * ax))


def _gelu(x):  # nn.GELU() default = exact-erf GELU
    return 0.5 * x * (1.0 + _erf_approx(x * _INV_SQRT2))


# -----------------------------------------------------------------------------
# Single fused kernel: embed -> L encoder layers -> final LN + head + fc + sigmoid
# Grid = (NUM_LAYERS,); token buffer resident in VMEM scratch across layers.
# -----------------------------------------------------------------------------
def _fused_vit_kernel(
        # embed inputs (precomputed host-side layout: scatter/pos already folded)
        patches_ref, conv_w_ref, base_ref, bias_ref,
        # per-layer encoder weights (leading layer dim squeezed via None block dim)
        ln1g_ref, ln1b_ref, qw_ref, qb_ref, kw_ref, kb_ref, vw_ref, vb_ref,
        ow_ref, ob_ref, ln2g_ref, ln2b_ref, w1_ref, b1_ref, w2_ref, b2_ref,
        # final LN + vit head + siamese fc params (constant blocks)
        lng_ref, lnb_ref, hw_ref, hb_ref, sel1_ref, sel2_ref,
        fw1a_ref, fw1b_ref, fb1_ref, fw2_ref, fb2_ref,
        fw3_ref, fb3_ref, fw4_ref, fb4_ref,
        # output + scratch
        out_ref, tok_vmem):
    layer = pl.program_id(0)

    # ---- patch embedding (first grid step only) -----------------------------
    # patches already scattered to token rows (zeros at cls rows) and the
    # positional embedding / cls token / conv bias folded into base_ref.
    @pl.when(layer == 0)
    def _():
        tok_vmem[...] = _mdot(patches_ref[...], conv_w_ref[...]) + base_ref[...]

    tok = tok_vmem[...]                                      # (M_pad, D), VMEM-resident

    # ---- pre-LN multi-head self-attention ------------------------------------
    h = _layer_norm(tok, ln1g_ref[...], ln1b_ref[...])
    q = _mdot(h, qw_ref[...]) + qb_ref[...]
    k = _mdot(h, kw_ref[...]) + kb_ref[...]
    v = _mdot(h, vw_ref[...]) + vb_ref[...]

    bias = bias_ref[...]                                     # block-diag + padding mask
    attn = ob_ref[...]                                       # out-proj bias, added once
    for hh in range(NUM_HEADS):                              # static, unrolled
        lo, hi = hh * HEAD_DIM, (hh + 1) * HEAD_DIM
        qh = q[:, lo:hi] * _ATTN_SCALE                       # true HEAD_DIM contraction
        s = _mdot_nt(qh, k[:, lo:hi]) + bias                 # (M_pad, M_pad)
        s = s - jnp.max(s, axis=-1, keepdims=True)
        p = jnp.exp(s)
        p = p * pl.reciprocal(jnp.sum(p, axis=-1, keepdims=True), approx=True)
        oh = _mdot(p, v[:, lo:hi])                           # (M_pad, HEAD_DIM)
        attn = attn + _mdot(oh, ow_ref[lo:hi, :])            # per-head out-proj rows
    tok = tok + attn

    # ---- pre-LN MLP block (Linear -> GELU -> Linear) -------------------------
    h2 = _layer_norm(tok, ln2g_ref[...], ln2b_ref[...])
    h2 = _gelu(_mdot(h2, w1_ref[...]) + b1_ref[...])
    tok = tok + _mdot(h2, w2_ref[...]) + b2_ref[...]
    tok_vmem[...] = tok

    # ---- final LN + vit head + siamese concat-fc + sigmoid (last step only) --
    @pl.when(layer == pl.num_programs(0) - 1)
    def _():
        # cls-row gather via exact f32 0/1 selection matmuls (precomputed host-side)
        cls1 = jnp.dot(sel1_ref[...], tok, preferred_element_type=jnp.float32)
        cls2 = jnp.dot(sel2_ref[...], tok, preferred_element_type=jnp.float32)
        g, b = lng_ref[...], lnb_ref[...]
        z1 = _mdot(_layer_norm(cls1, g, b), hw_ref[...]) + hb_ref[...]
        z2 = _mdot(_layer_norm(cls2, g, b), hw_ref[...]) + hb_ref[...]
        # fc(torch.cat([z1, z2], 1)) with pre-split first weight -> no concat needed
        hf = jnp.maximum(_mdot(z1, fw1a_ref[...]) + _mdot(z2, fw1b_ref[...])
                         + fb1_ref[...], 0.0)
        hf = jnp.maximum(_mdot(hf, fw2_ref[...]) + fb2_ref[...], 0.0)
        hf = jnp.maximum(_mdot(hf, fw3_ref[...]) + fb3_ref[...], 0.0)
        z = _mdot(hf, fw4_ref[...]) + fb4_ref[...]
        out_ref[...] = pl.reciprocal(1.0 + jnp.exp(-z), approx=False)   # exact sigmoid


def _fused_vit_pallas(patches_sc, base_full, bias_mask, sel1, sel2, params,
                      m_pad, batch):
    D = HIDDEN
    lw = params["layers"]

    def rep(shape):                      # whole-array block, constant across layers
        return pl.BlockSpec(shape, lambda l, _n=len(shape): (0,) * _n)

    def per_layer(*trailing):            # layer-l slice, leading dim squeezed away
        return pl.BlockSpec((None,) + trailing,
                            lambda l, _n=len(trailing): (l,) + (0,) * _n)

    in_specs = [
        rep(patches_sc.shape), rep(params["conv_w"].shape),
        rep(base_full.shape), rep(bias_mask.shape),
        per_layer(1, D), per_layer(1, D),                 # ln1 g/b
        per_layer(D, D), per_layer(1, D),                 # q w/b
        per_layer(D, D), per_layer(1, D),                 # k w/b
        per_layer(D, D), per_layer(1, D),                 # v w/b
        per_layer(D, D), per_layer(1, D),                 # out-proj w/b
        per_layer(1, D), per_layer(1, D),                 # ln2 g/b
        per_layer(D, MLP_DIM), per_layer(1, MLP_DIM),     # mlp w1/b1
        per_layer(MLP_DIM, D), per_layer(1, D),           # mlp w2/b2
        rep(params["ln_g"].shape), rep(params["ln_b"].shape),
        rep(params["head_w"].shape), rep(params["head_b"].shape),
        rep(sel1.shape), rep(sel2.shape),
        rep(params["fc_w1a"].shape), rep(params["fc_w1b"].shape), rep(params["fc_b1"].shape),
        rep(params["fc_w2"].shape), rep(params["fc_b2"].shape),
        rep(params["fc_w3"].shape), rep(params["fc_b3"].shape),
        rep(params["fc_w4"].shape), rep(params["fc_b4"].shape),
    ]

    return pl.pallas_call(
        _fused_vit_kernel,
        out_shape=jax.ShapeDtypeStruct((batch, 1), jnp.float32),
        grid=(NUM_LAYERS,),
        in_specs=in_specs,
        out_specs=pl.BlockSpec((batch, 1), lambda l: (0, 0)),   # resident across layers
        scratch_shapes=[pltpu.VMEM((m_pad, D), jnp.float32)],   # token buffer
        compiler_params=pltpu.CompilerParams(dimension_semantics=("arbitrary",)),
    )(patches_sc, params["conv_w"], base_full, bias_mask,
      lw["ln1_g"], lw["ln1_b"], lw["q_w"], lw["q_b"], lw["k_w"], lw["k_b"],
      lw["v_w"], lw["v_b"], lw["out_w"], lw["out_b"], lw["ln2_g"], lw["ln2_b"],
      lw["mlp_w1"], lw["mlp_b1"], lw["mlp_w2"], lw["mlp_b2"],
      params["ln_g"], params["ln_b"], params["head_w"], params["head_b"],
      sel1, sel2,
      params["fc_w1a"], params["fc_w1b"], params["fc_b1"],
      params["fc_w2"], params["fc_b2"], params["fc_w3"], params["fc_b3"],
      params["fc_w4"], params["fc_b4"])


# -----------------------------------------------------------------------------
# Parameters (deterministic, synthetic).  TODO(synk): pretrained ViT-L/32
# weights are replaced by synthetic init (no file / network access allowed).
# Matmul weights stored bf16 (MXU operands); biases/LN stay f32.
# -----------------------------------------------------------------------------
def init_params(key):
    keys = iter(jax.random.split(key, 16))
    patch_dim = IN_CH * PATCH * PATCH
    n = (IMG // PATCH) * (IMG // PATCH)
    seq = n + 1

    def xavier(k, fan_in, fan_out, shape, dtype=jnp.bfloat16):
        limit = math.sqrt(6.0 / (fan_in + fan_out))
        return jax.random.uniform(k, shape, jnp.float32, -limit, limit).astype(dtype)

    def stack_xavier(k, fan_in, fan_out, shape):
        ks = jax.random.split(k, NUM_LAYERS)
        return jnp.stack([xavier(ks[l], fan_in, fan_out, shape) for l in range(NUM_LAYERS)])

    layers = {
        "ln1_g": jnp.ones((NUM_LAYERS, 1, HIDDEN), jnp.float32),
        "ln1_b": jnp.zeros((NUM_LAYERS, 1, HIDDEN), jnp.float32),
        "q_w": stack_xavier(next(keys), HIDDEN, HIDDEN, (HIDDEN, HIDDEN)),
        "q_b": jnp.full((NUM_LAYERS, 1, HIDDEN), 0.01, jnp.float32),
        "k_w": stack_xavier(next(keys), HIDDEN, HIDDEN, (HIDDEN, HIDDEN)),
        "k_b": jnp.full((NUM_LAYERS, 1, HIDDEN), 0.01, jnp.float32),
        "v_w": stack_xavier(next(keys), HIDDEN, HIDDEN, (HIDDEN, HIDDEN)),
        "v_b": jnp.full((NUM_LAYERS, 1, HIDDEN), 0.01, jnp.float32),
        "out_w": stack_xavier(next(keys), HIDDEN, HIDDEN, (HIDDEN, HIDDEN)),
        "out_b": jnp.full((NUM_LAYERS, 1, HIDDEN), 0.01, jnp.float32),
        "ln2_g": jnp.ones((NUM_LAYERS, 1, HIDDEN), jnp.float32),
        "ln2_b": jnp.zeros((NUM_LAYERS, 1, HIDDEN), jnp.float32),
        "mlp_w1": stack_xavier(next(keys), HIDDEN, MLP_DIM, (HIDDEN, MLP_DIM)),
        "mlp_b1": jnp.full((NUM_LAYERS, 1, MLP_DIM), 0.01, jnp.float32),
        "mlp_w2": stack_xavier(next(keys), MLP_DIM, HIDDEN, (MLP_DIM, HIDDEN)),
        "mlp_b2": jnp.full((NUM_LAYERS, 1, HIDDEN), 0.01, jnp.float32),
    }

    fc_w1 = xavier(next(keys), 2 * NUM_CLASSES, FC_H1, (2 * NUM_CLASSES, FC_H1))
    return {
        "conv_w": (jax.random.normal(next(keys), (patch_dim, HIDDEN), jnp.float32)
                   * 0.02).astype(jnp.bfloat16),
        "conv_b": jnp.zeros((1, HIDDEN), jnp.float32),
        "cls_token": jax.random.normal(next(keys), (1, HIDDEN), jnp.float32) * 0.02,
        "pos_emb": jax.random.normal(next(keys), (seq, HIDDEN), jnp.float32) * 0.02,
        "ln_g": jnp.ones((1, HIDDEN), jnp.float32),
        "ln_b": jnp.zeros((1, HIDDEN), jnp.float32),
        "head_w": xavier(next(keys), HIDDEN, NUM_CLASSES, (HIDDEN, NUM_CLASSES)),
        "head_b": jnp.full((1, NUM_CLASSES), 0.01, jnp.float32),
        "fc_w1a": fc_w1[:NUM_CLASSES],          # consumes branch-1 logits
        "fc_w1b": fc_w1[NUM_CLASSES:],          # consumes branch-2 logits
        "fc_b1": jnp.full((1, FC_H1), 0.01, jnp.float32),
        "fc_w2": xavier(next(keys), FC_H1, FC_H1, (FC_H1, FC_H1)),
        "fc_b2": jnp.full((1, FC_H1), 0.01, jnp.float32),
        "fc_w3": xavier(next(keys), FC_H1, FC_H2, (FC_H1, FC_H2)),
        "fc_b3": jnp.full((1, FC_H2), 0.01, jnp.float32),
        "fc_w4": xavier(next(keys), FC_H2, 1, (FC_H2, 1)),
        "fc_b4": jnp.full((1, 1), 0.01, jnp.float32),
        "layers": layers,
    }


# -----------------------------------------------------------------------------
# Forward pass: host-side layout prep (patchify / scatter / masks) + ONE kernel
# -----------------------------------------------------------------------------
@jax.jit
def siamese_forward(params, input1, input2):
    B = input1.shape[0]
    x = jnp.concatenate([input1, input2], axis=0)           # (2B, C, H, W), shared weights
    B2, C, H, W = x.shape
    nh, nw = H // PATCH, W // PATCH
    n = nh * nw
    seq = n + 1
    M = B2 * seq
    m_pad = -(-M // 8) * 8                                   # pad rows to sublane multiple

    # conv_proj(k=stride=PATCH) == patchify + linear projection; patch rows are
    # scattered host-side to token rows b*seq + 1 + t (zeros at cls/pad rows).
    patches = x.reshape(B2, C, nh, PATCH, nw, PATCH)
    patches = jnp.transpose(patches, (0, 2, 4, 1, 3, 5)).reshape(B2 * n, C * PATCH * PATCH)
    row_idx = (jnp.arange(B2)[:, None] * seq + 1 + jnp.arange(n)[None, :]).reshape(-1)
    patches_sc = jnp.zeros((m_pad, patches.shape[1]), jnp.float32).at[row_idx].set(patches)

    # per-row base = pos embedding tiled per image, cls token folded into row 0,
    # conv bias folded into patch rows (pad rows stay zero).
    tok_base = jnp.concatenate(
        [params["cls_token"] + params["pos_emb"][:1], params["pos_emb"][1:]], axis=0)
    base = jnp.tile(tok_base, (B2, 1))
    is_patch_row = ((jnp.arange(M) % seq) != 0).astype(jnp.float32)[:, None]
    base = base + is_patch_row * params["conv_b"]
    base_full = jnp.zeros((m_pad, HIDDEN), jnp.float32).at[:M].set(base)

    # block-diagonal attention bias: tokens only attend within their own image;
    # padded rows/cols are fully masked (finite constant -> no NaNs, never read).
    img_id = jnp.arange(m_pad) // seq
    valid = jnp.arange(m_pad) < M
    same = (img_id[:, None] == img_id[None, :]) & valid[:, None] & valid[None, :]
    bias_mask = jnp.where(same, 0.0, _NEG_BIG).astype(jnp.float32)

    # cls-row selection matrices for the two siamese branches
    rows = jnp.arange(m_pad)[None, :]
    sel1 = (rows == (jnp.arange(B) * seq)[:, None]).astype(jnp.float32)
    sel2 = (rows == ((jnp.arange(B) + B) * seq)[:, None]).astype(jnp.float32)

    # TODO(synk): encoder dropout omitted (p=0.0 in vit_l_32, identity at inference).
    return _fused_vit_pallas(patches_sc, base_full, bias_mask, sel1, sel2,
                             params, m_pad, B)               # (B, 1) in (0, 1)


if __name__ == "__main__":
    key = jax.random.PRNGKey(0)
    kp, k1, k2 = jax.random.split(key, 3)
    params = init_params(kp)
    x1 = jax.random.normal(k1, (2, IN_CH, IMG, IMG), jnp.float32)
    x2 = jax.random.normal(k2, (2, IN_CH, IMG, IMG), jnp.float32)

    out = jax.block_until_ready(siamese_forward(params, x1, x2))
    assert out.shape == (2, 1)
    assert bool(jnp.all(jnp.isfinite(out)))
    assert bool(jnp.all((out >= 0.0) & (out <= 1.0)))
    print("KERNEL_OK")
</pallas_src>

<mosaic_0001>
module attributes {stable_mosaic.version = 11 : i64} {
  func.func @_fused_vit_kernel(%arg0: i32, %arg1: memref<24x64xf32, #tpu.memory_space<vmem>>, %arg2: memref<64x32xbf16, #tpu.memory_space<vmem>>, %arg3: memref<24x32xf32, #tpu.memory_space<vmem>>, %arg4: memref<24x24xf32, #tpu.memory_space<vmem>>, %arg5: memref<1x1x32xf32, #tpu.memory_space<vmem>>, %arg6: memref<1x1x32xf32, #tpu.memory_space<vmem>>, %arg7: memref<1x32x32xbf16, #tpu.memory_space<vmem>>, %arg8: memref<1x1x32xf32, #tpu.memory_space<vmem>>, %arg9: memref<1x32x32xbf16, #tpu.memory_space<vmem>>, %arg10: memref<1x1x32xf32, #tpu.memory_space<vmem>>, %arg11: memref<1x32x32xbf16, #tpu.memory_space<vmem>>, %arg12: memref<1x1x32xf32, #tpu.memory_space<vmem>>, %arg13: memref<1x32x32xbf16, #tpu.memory_space<vmem>>, %arg14: memref<1x1x32xf32, #tpu.memory_space<vmem>>, %arg15: memref<1x1x32xf32, #tpu.memory_space<vmem>>, %arg16: memref<1x1x32xf32, #tpu.memory_space<vmem>>, %arg17: memref<1x32x64xbf16, #tpu.memory_space<vmem>>, %arg18: memref<1x1x64xf32, #tpu.memory_space<vmem>>, %arg19: memref<1x64x32xbf16, #tpu.memory_space<vmem>>, %arg20: memref<1x1x32xf32, #tpu.memory_space<vmem>>, %arg21: memref<1x32xf32, #tpu.memory_space<vmem>>, %arg22: memref<1x32xf32, #tpu.memory_space<vmem>>, %arg23: memref<32x16xbf16, #tpu.memory_space<vmem>>, %arg24: memref<1x16xf32, #tpu.memory_space<vmem>>, %arg25: memref<2x24xf32, #tpu.memory_space<vmem>>, %arg26: memref<2x24xf32, #tpu.memory_space<vmem>>, %arg27: memref<16x32xbf16, #tpu.memory_space<vmem>>, %arg28: memref<16x32xbf16, #tpu.memory_space<vmem>>, %arg29: memref<1x32xf32, #tpu.memory_space<vmem>>, %arg30: memref<32x32xbf16, #tpu.memory_space<vmem>>, %arg31: memref<1x32xf32, #tpu.memory_space<vmem>>, %arg32: memref<32x16xbf16, #tpu.memory_space<vmem>>, %arg33: memref<1x16xf32, #tpu.memory_space<vmem>>, %arg34: memref<16x1xbf16, #tpu.memory_space<vmem>>, %arg35: memref<1x1xf32, #tpu.memory_space<vmem>>, %arg36: memref<2x1xf32, #tpu.memory_space<vmem>>, %arg37: memref<24x32xf32, #tpu.memory_space<vmem>>) attributes {dimension_semantics = [#tpu.dimension_semantics<arbitrary>], iteration_bounds = array<i64: 2>, scalar_prefetch = 0 : i64, scratch_operands = 1 : i64, tpu.core_type = #tpu.core_type<tc>, window_params = [{pipeline_mode = #tpu.pipeline_mode<synchronous>, transform_indices = @transform_0, window_bounds = array<i64: 24, 64>}, {pipeline_mode = #tpu.pipeline_mode<synchronous>, transform_indices = @transform_1, window_bounds = array<i64: 64, 32>}, {pipeline_mode = #tpu.pipeline_mode<synchronous>, transform_indices = @transform_2, window_bounds = array<i64: 24, 32>}, {pipeline_mode = #tpu.pipeline_mode<synchronous>, transform_indices = @transform_3, window_bounds = array<i64: 24, 24>}, {transform_indices = @transform_4, window_bounds = array<i64: 1, 1, 32>}, {transform_indices = @transform_5, window_bounds = array<i64: 1, 1, 32>}, {transform_indices = @transform_6, window_bounds = array<i64: 1, 32, 32>}, {transform_indices = @transform_7, window_bounds = array<i64: 1, 1, 32>}, {transform_indices = @transform_8, window_bounds = array<i64: 1, 32, 32>}, {transform_indices = @transform_9, window_bounds = array<i64: 1, 1, 32>}, {transform_indices = @transform_10, window_bounds = array<i64: 1, 32, 32>}, {transform_indices = @transform_11, window_bounds = array<i64: 1, 1, 32>}, {transform_indices = @transform_12, window_bounds = array<i64: 1, 32, 32>}, {transform_indices = @transform_13, window_bounds = array<i64: 1, 1, 32>}, {transform_indices = @transform_14, window_bounds = array<i64: 1, 1, 32>}, {transform_indices = @transform_15, window_bounds = array<i64: 1, 1, 32>}, {transform_indices = @transform_16, window_bounds = array<i64: 1, 32, 64>}, {transform_indices = @transform_17, window_bounds = array<i64: 1, 1, 64>}, {transform_indices = @transform_18, window_bounds = array<i64: 1, 64, 32>}, {transform_indices = @transform_19, window_bounds = array<i64: 1, 1, 32>}, {pipeline_mode = #tpu.pipeline_mode<synchronous>, transform_indices = @transform_20, window_bounds = array<i64: 1, 32>}, {pipeline_mode = #tpu.pipeline_mode<synchronous>, transform_indices = @transform_21, window_bounds = array<i64: 1, 32>}, {pipeline_mode = #tpu.pipeline_mode<synchronous>, transform_indices = @transform_22, window_bounds = array<i64: 32, 16>}, {pipeline_mode = #tpu.pipeline_mode<synchronous>, transform_indices = @transform_23, window_bounds = array<i64: 1, 16>}, {pipeline_mode = #tpu.pipeline_mode<synchronous>, transform_indices = @transform_24, window_bounds = array<i64: 2, 24>}, {pipeline_mode = #tpu.pipeline_mode<synchronous>, transform_indices = @transform_25, window_bounds = array<i64: 2, 24>}, {pipeline_mode = #tpu.pipeline_mode<synchronous>, transform_indices = @transform_26, window_bounds = array<i64: 16, 32>}, {pipeline_mode = #tpu.pipeline_mode<synchronous>, transform_indices = @transform_27, window_bounds = array<i64: 16, 32>}, {pipeline_mode = #tpu.pipeline_mode<synchronous>, transform_indices = @transform_28, window_bounds = array<i64: 1, 32>}, {pipeline_mode = #tpu.pipeline_mode<synchronous>, transform_indices = @transform_29, window_bounds = array<i64: 32, 32>}, {pipeline_mode = #tpu.pipeline_mode<synchronous>, transform_indices = @transform_30, window_bounds = array<i64: 1, 32>}, {pipeline_mode = #tpu.pipeline_mode<synchronous>, transform_indices = @transform_31, window_bounds = array<i64: 32, 16>}, {pipeline_mode = #tpu.pipeline_mode<synchronous>, transform_indices = @transform_32, window_bounds = array<i64: 1, 16>}, {pipeline_mode = #tpu.pipeline_mode<synchronous>, transform_indices = @transform_33, window_bounds = array<i64: 16, 1>}, {pipeline_mode = #tpu.pipeline_mode<synchronous>, transform_indices = @transform_34, window_bounds = array<i64: 1, 1>}, {pipeline_mode = #tpu.pipeline_mode<synchronous>, transform_indices = @transform_35, window_bounds = array<i64: 2, 1>}]} {
    %c0_i32 = arith.constant 0 : i32
    %0 = arith.cmpi eq, %arg0, %c0_i32 : i32
    %1 = arith.extui %0 : i1 to i32
    %c0_i32_0 = arith.constant 0 : i32
    %2 = arith.cmpi ne, %1, %c0_i32_0 : i32
    scf.if %2 {
      %c0_98 = arith.constant 0 : index
      %c0_99 = arith.constant 0 : index
      %196 = vector.load %arg1[%c0_98, %c0_99] : memref<24x64xf32, #tpu.memory_space<vmem>>, vector<24x64xf32>
      %c0_100 = arith.constant 0 : index
      %c0_101 = arith.constant 0 : index
      %197 = vector.load %arg2[%c0_100, %c0_101] : memref<64x32xbf16, #tpu.memory_space<vmem>>, vector<64x32xbf16>
      %198 = arith.truncf %196 : vector<24x64xf32> to vector<24x64xbf16>
      %cst_102 = arith.constant dense<0.000000e+00> : vector<24x32xf32>
      %199 = tpu.matmul %198, %197, %cst_102 {dimension_numbers = #tpu.dot_dimension_numbers<[1], [0], [0], [1], [0, 0, 1, 1], [], []>} : vector<24x64xbf16>, vector<64x32xbf16>, vector<24x32xf32> -> vector<24x32xf32>
      %c0_103 = arith.constant 0 : index
      %c0_104 = arith.constant 0 : index
      %200 = vector.load %arg3[%c0_103, %c0_104] : memref<24x32xf32, #tpu.memory_space<vmem>>, vector<24x32xf32>
      %201 = arith.addf %199, %200 : vector<24x32xf32>
      %c0_105 = arith.constant 0 : index
      %c0_106 = arith.constant 0 : index
      %202 = vector.load %arg37[%c0_105, %c0_106] : memref<24x32xf32, #tpu.memory_space<vmem>>, vector<24x32xf32>
      tpu.vector_store %arg37[%c0_105, %c0_106], %201 {strides = array<i32>} : memref<24x32xf32, #tpu.memory_space<vmem>>, vector<24x32xf32>,
    } else {
    }
    %c0 = arith.constant 0 : index
    %c0_1 = arith.constant 0 : index
    %3 = vector.load %arg37[%c0, %c0_1] : memref<24x32xf32, #tpu.memory_space<vmem>>, vector<24x32xf32>
    %c0_2 = arith.constant 0 : index
    %c0_3 = arith.constant 0 : index
    %c0_4 = arith.constant 0 : index
    %4 = vector.load %arg5[%c0_2, %c0_3, %c0_4] : memref<1x1x32xf32, #tpu.memory_space<vmem>>, vector<1x1x32xf32>
    %5 = vector.shape_cast %4 : vector<1x1x32xf32> to vector<1x32xf32>
    %c0_5 = arith.constant 0 : index
    %c0_6 = arith.constant 0 : index
    %c0_7 = arith.constant 0 : index
    %6 = vector.load %arg6[%c0_5, %c0_6, %c0_7] : memref<1x1x32xf32, #tpu.memory_space<vmem>>, vector<1x1x32xf32>
    %7 = vector.shape_cast %6 : vector<1x1x32xf32> to vector<1x32xf32>
    %cst = arith.constant dense<0.000000e+00> : vector<24xf32>
    %8 = vector.multi_reduction <add>, %3, %cst [1] : vector<24x32xf32> to vector<24xf32>
    %9 = vector.shape_cast %8 : vector<24xf32> to vector<24x1xf32>
    %cst_8 = arith.constant 3.200000e+01 : f32
    %10 = vector.broadcast %cst_8 : f32 to vector<24x1xf32>
    %11 = arith.divf %9, %10 : vector<24x1xf32>
    %12 = vector.broadcast %11 : vector<24x1xf32> to vector<24x32xf32>
    %13 = arith.subf %3, %12 : vector<24x32xf32>
    %14 = arith.mulf %13, %13 : vector<24x32xf32>
    %cst_9 = arith.constant dense<0.000000e+00> : vector<24xf32>
    %15 = vector.multi_reduction <add>, %14, %cst_9 [1] : vector<24x32xf32> to vector<24xf32>
    %16 = vector.shape_cast %15 : vector<24xf32> to vector<24x1xf32>
    %cst_10 = arith.constant 3.200000e+01 : f32
    %17 = vector.broadcast %cst_10 : f32 to vector<24x1xf32>
    %18 = arith.divf %16, %17 : vector<24x1xf32>
    %cst_11 = arith.constant 9.99999997E-7 : f32
    %19 = vector.broadcast %cst_11 : f32 to vector<24x1xf32>
    %20 = arith.addf %18, %19 : vector<24x1xf32>
    %21 = math.rsqrt %20 : vector<24x1xf32>
    %22 = vector.broadcast %21 : vector<24x1xf32> to vector<24x32xf32>
    %23 = arith.mulf %13, %22 : vector<24x32xf32>
    %24 = vector.broadcast %5 : vector<1x32xf32> to vector<24x32xf32>
    %25 = arith.mulf %23, %24 : vector<24x32xf32>
    %26 = vector.broadcast %7 : vector<1x32xf32> to vector<24x32xf32>
    %27 = arith.addf %25, %26 : vector<24x32xf32>
    %c0_12 = arith.constant 0 : index
    %c0_13 = arith.constant 0 : index
    %c0_14 = arith.constant 0 : index
    %28 = vector.load %arg7[%c0_12, %c0_13, %c0_14] : memref<1x32x32xbf16, #tpu.memory_space<vmem>>, vector<1x32x32xbf16>
    %29 = vector.shape_cast %28 : vector<1x32x32xbf16> to vector<32x32xbf16>
    %30 = arith.truncf %27 : vector<24x32xf32> to vector<24x32xbf16>
    %cst_15 = arith.constant dense<0.000000e+00> : vector<24x32xf32>
    %31 = tpu.matmul %30, %29, %cst_15 {dimension_numbers = #tpu.dot_dimension_numbers<[1], [0], [0], [1], [0, 0, 1, 1], [], []>} : vector<24x32xbf16>, vector<32x32xbf16>, vector<24x32xf32> -> vector<24x32xf32>
    %c0_16 = arith.constant 0 : index
    %c0_17 = arith.constant 0 : index
    %c0_18 = arith.constant 0 : index
    %32 = vector.load %arg8[%c0_16, %c0_17, %c0_18] : memref<1x1x32xf32, #tpu.memory_space<vmem>>, vector<1x1x32xf32>
    %33 = vector.shape_cast %32 : vector<1x1x32xf32> to vector<1x32xf32>
    %34 = vector.broadcast %33 : vector<1x32xf32> to vector<24x32xf32>
    %35 = arith.addf %31, %34 : vector<24x32xf32>
    %c0_19 = arith.constant 0 : index
    %c0_20 = arith.constant 0 : index
    %c0_21 = arith.constant 0 : index
    %36 = vector.load %arg9[%c0_19, %c0_20, %c0_21] : memref<1x32x32xbf16, #tpu.memory_space<vmem>>, vector<1x32x32xbf16>
    %37 = vector.shape_cast %36 : vector<1x32x32xbf16> to vector<32x32xbf16>
    %38 = arith.truncf %27 : vector<24x32xf32> to vector<24x32xbf16>
    %cst_22 = arith.constant dense<0.000000e+00> : vector<24x32xf32>
    %39 = tpu.matmul %38, %37, %cst_22 {dimension_numbers = #tpu.dot_dimension_numbers<[1], [0], [0], [1], [0, 0, 1, 1], [], []>} : vector<24x32xbf16>, vector<32x32xbf16>, vector<24x32xf32> -> vector<24x32xf32>
    %c0_23 = arith.constant 0 : index
    %c0_24 = arith.constant 0 : index
    %c0_25 = arith.constant 0 : index
    %40 = vector.load %arg10[%c0_23, %c0_24, %c0_25] : memref<1x1x32xf32, #tpu.memory_space<vmem>>, vector<1x1x32xf32>
    %41 = vector.shape_cast %40 : vector<1x1x32xf32> to vector<1x32xf32>
    %42 = vector.broadcast %41 : vector<1x32xf32> to vector<24x32xf32>
    %43 = arith.addf %39, %42 : vector<24x32xf32>
    %c0_26 = arith.constant 0 : index
    %c0_27 = arith.constant 0 : index
    %c0_28 = arith.constant 0 : index
    %44 = vector.load %arg11[%c0_26, %c0_27, %c0_28] : memref<1x32x32xbf16, #tpu.memory_space<vmem>>, vector<1x32x32xbf16>
    %45 = vector.shape_cast %44 : vector<1x32x32xbf16> to vector<32x32xbf16>
    %46 = arith.truncf %27 : vector<24x32xf32> to vector<24x32xbf16>
    %cst_29 = arith.constant dense<0.000000e+00> : vector<24x32xf32>
    %47 = tpu.matmul %46, %45, %cst_29 {dimension_numbers = #tpu.dot_dimension_numbers<[1], [0], [0], [1], [0, 0, 1, 1], [], []>} : vector<24x32xbf16>, vector<32x32xbf16>, vector<24x32xf32> -> vector<24x32xf32>
    %c0_30 = arith.constant 0 : index
    %c0_31 = arith.constant 0 : index
    %c0_32 = arith.constant 0 : index
    %48 = vector.load %arg12[%c0_30, %c0_31, %c0_32] : memref<1x1x32xf32, #tpu.memory_space<vmem>>, vector<1x1x32xf32>
    %49 = vector.shape_cast %48 : vector<1x1x32xf32> to vector<1x32xf32>
    %50 = vector.broadcast %49 : vector<1x32xf32> to vector<24x32xf32>
    %51 = arith.addf %47, %50 : vector<24x32xf32>
    %c0_33 = arith.constant 0 : index
    %c0_34 = arith.constant 0 : index
    %52 = vector.load %arg4[%c0_33, %c0_34] : memref<24x24xf32, #tpu.memory_space<vmem>>, vector<24x24xf32>
    %c0_35 = arith.constant 0 : index
    %c0_36 = arith.constant 0 : index
    %c0_37 = arith.constant 0 : index
    %53 = vector.load %arg14[%c0_35, %c0_36, %c0_37] : memref<1x1x32xf32, #tpu.memory_space<vmem>>, vector<1x1x32xf32>
    %54 = vector.shape_cast %53 : vector<1x1x32xf32> to vector<1x32xf32>
    %55 = vector.extract_strided_slice %35 {offsets = [0, 0], sizes = [24, 16], strides = [1, 1]} : vector<24x32xf32> to vector<24x16xf32>
    %cst_38 = arith.constant 2.500000e-01 : f32
    %56 = vector.broadcast %cst_38 : f32 to vector<24x16xf32>
    %57 = arith.mulf %55, %56 : vector<24x16xf32>
    %58 = vector.extract_strided_slice %43 {offsets = [0, 0], sizes = [24, 16], strides = [1, 1]} : vector<24x32xf32> to vector<24x16xf32>
    %59 = arith.truncf %57 : vector<24x16xf32> to vector<24x16xbf16>
    %60 = arith.truncf %58 : vector<24x16xf32> to vector<24x16xbf16>
    %cst_39 = arith.constant dense<0.000000e+00> : vector<24x24xf32>
    %61 = tpu.matmul %59, %60, %cst_39 {dimension_numbers = #tpu.dot_dimension_numbers<[1], [1], [0], [0], [0, 0, 1, 0], [], []>} : vector<24x16xbf16>, vector<24x16xbf16>, vector<24x24xf32> -> vector<24x24xf32>
    %62 = arith.addf %61, %52 : vector<24x24xf32>
    %cst_40 = arith.constant dense<0xFF800000> : vector<24xf32>
    %63 = vector.multi_reduction <maximumf>, %62, %cst_40 [1] : vector<24x24xf32> to vector<24xf32>
    %64 = vector.shape_cast %63 : vector<24xf32> to vector<24x1xf32>
    %65 = vector.broadcast %64 : vector<24x1xf32> to vector<24x24xf32>
    %66 = arith.subf %62, %65 : vector<24x24xf32>
    %67 = math.exp %66 : vector<24x24xf32>
    %cst_41 = arith.constant dense<0.000000e+00> : vector<24xf32>
    %68 = vector.multi_reduction <add>, %67, %cst_41 [1] : vector<24x24xf32> to vector<24xf32>
    %69 = vector.shape_cast %68 : vector<24xf32> to vector<24x1xf32>
    %70 = tpu.reciprocal %69 {approx = true} : vector<24x1xf32> -> vector<24x1xf32>
    %71 = vector.broadcast %70 : vector<24x1xf32> to vector<24x24xf32>
    %72 = arith.mulf %67, %71 : vector<24x24xf32>
    %73 = vector.extract_strided_slice %51 {offsets = [0, 0], sizes = [24, 16], strides = [1, 1]} : vector<24x32xf32> to vector<24x16xf32>
    %74 = arith.truncf %72 : vector<24x24xf32> to vector<24x24xbf16>
    %75 = arith.truncf %73 : vector<24x16xf32> to vector<24x16xbf16>
    %cst_42 = arith.constant dense<0.000000e+00> : vector<24x16xf32>
    %76 = tpu.matmul %74, %75, %cst_42 {dimension_numbers = #tpu.dot_dimension_numbers<[1], [0], [0], [1], [0, 0, 1, 1], [], []>} : vector<24x24xbf16>, vector<24x16xbf16>, vector<24x16xf32> -> vector<24x16xf32>
    %c0_43 = arith.constant 0 : index
    %c0_44 = arith.constant 0 : index
    %c0_45 = arith.constant 0 : index
    %77 = vector.load %arg13[%c0_43, %c0_44, %c0_45] : memref<1x32x32xbf16, #tpu.memory_space<vmem>>, vector<1x16x32xbf16>
    %78 = vector.shape_cast %77 : vector<1x16x32xbf16> to vector<16x32xbf16>
    %79 = arith.truncf %76 : vector<24x16xf32> to vector<24x16xbf16>
    %cst_46 = arith.constant dense<0.000000e+00> : vector<24x32xf32>
    %80 = tpu.matmul %79, %78, %cst_46 {dimension_numbers = #tpu.dot_dimension_numbers<[1], [0], [0], [1], [0, 0, 1, 1], [], []>} : vector<24x16xbf16>, vector<16x32xbf16>, vector<24x32xf32> -> vector<24x32xf32>
    %81 = vector.broadcast %54 : vector<1x32xf32> to vector<24x32xf32>
    %82 = arith.addf %81, %80 : vector<24x32xf32>
    %83 = vector.extract_strided_slice %35 {offsets = [0, 16], sizes = [24, 16], strides = [1, 1]} : vector<24x32xf32> to vector<24x16xf32>
    %cst_47 = arith.constant 2.500000e-01 : f32
    %84 = vector.broadcast %cst_47 : f32 to vector<24x16xf32>
    %85 = arith.mulf %83, %84 : vector<24x16xf32>
    %86 = vector.extract_strided_slice %43 {offsets = [0, 16], sizes = [24, 16], strides = [1, 1]} : vector<24x32xf32> to vector<24x16xf32>
    %87 = arith.truncf %85 : vector<24x16xf32> to vector<24x16xbf16>
    %88 = arith.truncf %86 : vector<24x16xf32> to vector<24x16xbf16>
    %cst_48 = arith.constant dense<0.000000e+00> : vector<24x24xf32>
    %89 = tpu.matmul %87, %88, %cst_48 {dimension_numbers = #tpu.dot_dimension_numbers<[1], [1], [0], [0], [0, 0, 1, 0], [], []>} : vector<24x16xbf16>, vector<24x16xbf16>, vector<24x24xf32> -> vector<24x24xf32>
    %90 = arith.addf %89, %52 : vector<24x24xf32>
    %cst_49 = arith.constant dense<0xFF800000> : vector<24xf32>
    %91 = vector.multi_reduction <maximumf>, %90, %cst_49 [1] : vector<24x24xf32> to vector<24xf32>
    %92 = vector.shape_cast %91 : vector<24xf32> to vector<24x1xf32>
    %93 = vector.broadcast %92 : vector<24x1xf32> to vector<24x24xf32>
    %94 = arith.subf %90, %93 : vector<24x24xf32>
    %95 = math.exp %94 : vector<24x24xf32>
    %cst_50 = arith.constant dense<0.000000e+00> : vector<24xf32>
    %96 = vector.multi_reduction <add>, %95, %cst_50 [1] : vector<24x24xf32> to vector<24xf32>
    %97 = vector.shape_cast %96 : vector<24xf32> to vector<24x1xf32>
    %98 = tpu.reciprocal %97 {approx = true} : vector<24x1xf32> -> vector<24x1xf32>
    %99 = vector.broadcast %98 : vector<24x1xf32> to vector<24x24xf32>
    %100 = arith.mulf %95, %99 : vector<24x24xf32>
    %101 = vector.extract_strided_slice %51 {offsets = [0, 16], sizes = [24, 16], strides = [1, 1]} : vector<24x32xf32> to vector<24x16xf32>
    %102 = arith.truncf %100 : vector<24x24xf32> to vector<24x24xbf16>
    %103 = arith.truncf %101 : vector<24x16xf32> to vector<24x16xbf16>
    %cst_51 = arith.constant dense<0.000000e+00> : vector<24x16xf32>
    %104 = tpu.matmul %102, %103, %cst_51 {dimension_numbers = #tpu.dot_dimension_numbers<[1], [0], [0], [1], [0, 0, 1, 1], [], []>} : vector<24x24xbf16>, vector<24x16xbf16>, vector<24x16xf32> -> vector<24x16xf32>
    %c0_52 = arith.constant 0 : index
    %c16 = arith.constant 16 : index
    %c0_53 = arith.constant 0 : index
    %105 = vector.load %arg13[%c0_52, %c16, %c0_53] : memref<1x32x32xbf16, #tpu.memory_space<vmem>>, vector<1x16x32xbf16>
    %106 = vector.shape_cast %105 : vector<1x16x32xbf16> to vector<16x32xbf16>
    %107 = arith.truncf %104 : vector<24x16xf32> to vector<24x16xbf16>
    %cst_54 = arith.constant dense<0.000000e+00> : vector<24x32xf32>
    %108 = tpu.matmul %107, %106, %cst_54 {dimension_numbers = #tpu.dot_dimension_numbers<[1], [0], [0], [1], [0, 0, 1, 1], [], []>} : vector<24x16xbf16>, vector<16x32xbf16>, vector<24x32xf32> -> vector<24x32xf32>
    %109 = arith.addf %82, %108 : vector<24x32xf32>
    %110 = arith.addf %3, %109 : vector<24x32xf32>
    %c0_55 = arith.constant 0 : index
    %c0_56 = arith.constant 0 : index
    %c0_57 = arith.constant 0 : index
    %111 = vector.load %arg15[%c0_55, %c0_56, %c0_57] : memref<1x1x32xf32, #tpu.memory_space<vmem>>, vector<1x1x32xf32>
    %112 = vector.shape_cast %111 : vector<1x1x32xf32> to vector<1x32xf32>
    %c0_58 = arith.constant 0 : index
    %c0_59 = arith.constant 0 : index
    %c0_60 = arith.constant 0 : index
    %113 = vector.load %arg16[%c0_58, %c0_59, %c0_60] : memref<1x1x32xf32, #tpu.memory_space<vmem>>, vector<1x1x32xf32>
    %114 = vector.shape_cast %113 : vector<1x1x32xf32> to vector<1x32xf32>
    %cst_61 = arith.constant dense<0.000000e+00> : vector<24xf32>
    %115 = vector.multi_reduction <add>, %110, %cst_61 [1] : vector<24x32xf32> to vector<24xf32>
    %116 = vector.shape_cast %115 : vector<24xf32> to vector<24x1xf32>
    %cst_62 = arith.constant 3.200000e+01 : f32
    %117 = vector.broadcast %cst_62 : f32 to vector<24x1xf32>
    %118 = arith.divf %116, %117 : vector<24x1xf32>
    %119 = vector.broadcast %118 : vector<24x1xf32> to vector<24x32xf32>
    %120 = arith.subf %110, %119 : vector<24x32xf32>
    %121 = arith.mulf %120, %120 : vector<24x32xf32>
    %cst_63 = arith.constant dense<0.000000e+00> : vector<24xf32>
    %122 = vector.multi_reduction <add>, %121, %cst_63 [1] : vector<24x32xf32> to vector<24xf32>
    %123 = vector.shape_cast %122 : vector<24xf32> to vector<24x1xf32>
    %cst_64 = arith.constant 3.200000e+01 : f32
    %124 = vector.broadcast %cst_64 : f32 to vector<24x1xf32>
    %125 = arith.divf %123, %124 : vector<24x1xf32>
    %cst_65 = arith.constant 9.99999997E-7 : f32
    %126 = vector.broadcast %cst_65 : f32 to vector<24x1xf32>
    %127 = arith.addf %125, %126 : vector<24x1xf32>
    %128 = math.rsqrt %127 : vector<24x1xf32>
    %129 = vector.broadcast %128 : vector<24x1xf32> to vector<24x32xf32>
    %130 = arith.mulf %120, %129 : vector<24x32xf32>
    %131 = vector.broadcast %112 : vector<1x32xf32> to vector<24x32xf32>
    %132 = arith.mulf %130, %131 : vector<24x32xf32>
    %133 = vector.broadcast %114 : vector<1x32xf32> to vector<24x32xf32>
    %134 = arith.addf %132, %133 : vector<24x32xf32>
    %c0_66 = arith.constant 0 : index
    %c0_67 = arith.constant 0 : index
    %c0_68 = arith.constant 0 : index
    %135 = vector.load %arg17[%c0_66, %c0_67, %c0_68] : memref<1x32x64xbf16, #tpu.memory_space<vmem>>, vector<1x32x64xbf16>
    %136 = vector.shape_cast %135 : vector<1x32x64xbf16> to vector<32x64xbf16>
    %137 = arith.truncf %134 : vector<24x32xf32> to vector<24x32xbf16>
    %cst_69 = arith.constant dense<0.000000e+00> : vector<24x64xf32>
    %138 = tpu.matmul %137, %136, %cst_69 {dimension_numbers = #tpu.dot_dimension_numbers<[1], [0], [0], [1], [0, 0, 1, 1], [], []>} : vector<24x32xbf16>, vector<32x64xbf16>, vector<24x64xf32> -> vector<24x64xf32>
    %c0_70 = arith.constant 0 : index
    %c0_71 = arith.constant 0 : index
    %c0_72 = arith.constant 0 : index
    %139 = vector.load %arg18[%c0_70, %c0_71, %c0_72] : memref<1x1x64xf32, #tpu.memory_space<vmem>>, vector<1x1x64xf32>
    %140 = vector.shape_cast %139 : vector<1x1x64xf32> to vector<1x64xf32>
    %141 = vector.broadcast %140 : vector<1x64xf32> to vector<24x64xf32>
    %142 = arith.addf %138, %141 : vector<24x64xf32>
    %cst_73 = arith.constant 5.000000e-01 : f32
    %143 = vector.broadcast %cst_73 : f32 to vector<24x64xf32>
    %144 = arith.mulf %143, %142 : vector<24x64xf32>
    %cst_74 = arith.constant 0.707106769 : f32
    %145 = vector.broadcast %cst_74 : f32 to vector<24x64xf32>
    %146 = arith.mulf %142, %145 : vector<24x64xf32>
    %cst_75 = arith.constant 0.000000e+00 : f32
    %147 = vector.broadcast %cst_75 : f32 to vector<24x64xf32>
    %148 = arith.cmpf oge, %146, %147 : vector<24x64xf32>
    %cst_76 = arith.constant 1.000000e+00 : f32
    %cst_77 = arith.constant -1.000000e+00 : f32
    %149 = vector.broadcast %cst_76 : f32 to vector<24x64xf32>
    %150 = vector.broadcast %cst_77 : f32 to vector<24x64xf32>
    %151 = arith.select %148, %149, %150 : vector<24x64xi1>, vector<24x64xf32>
    %152 = math.absf %146 : vector<24x64xf32>
    %cst_78 = arith.constant 0.327591091 : f32
    %153 = vector.broadcast %cst_78 : f32 to vector<24x64xf32>
    %154 = arith.mulf %153, %152 : vector<24x64xf32>
    %cst_79 = arith.constant 1.000000e+00 : f32
    %155 = vector.broadcast %cst_79 : f32 to vector<24x64xf32>
    %156 = arith.addf %155, %154 : vector<24x64xf32>
    %157 = tpu.reciprocal %156 {approx = true} : vector<24x64xf32> -> vector<24x64xf32>
    %cst_80 = arith.constant 1.06140542 : f32
    %158 = vector.broadcast %cst_80 : f32 to vector<24x64xf32>
    %159 = arith.mulf %158, %157 : vector<24x64xf32>
    %cst_81 = arith.constant -1.45315206 : f32
    %160 = vector.broadcast %cst_81 : f32 to vector<24x64xf32>
    %161 = arith.addf %159, %160 : vector<24x64xf32>
    %162 = arith.mulf %161, %157 : vector<24x64xf32>
    %cst_82 = arith.constant 1.42141378 : f32
    %163 = vector.broadcast %cst_82 : f32 to vector<24x64xf32>
    %164 = arith.addf %162, %163 : vector<24x64xf32>
    %165 = arith.mulf %164, %157 : vector<24x64xf32>
    %cst_83 = arith.constant -0.284496725 : f32
    %166 = vector.broadcast %cst_83 : f32 to vector<24x64xf32>
    %167 = arith.addf %165, %166 : vector<24x64xf32>
    %168 = arith.mulf %167, %157 : vector<24x64xf32>
    %cst_84 = arith.constant 0.254829586 : f32
    %169 = vector.broadcast %cst_84 : f32 to vector<24x64xf32>
    %170 = arith.addf %168, %169 : vector<24x64xf32>
    %171 = arith.mulf %170, %157 : vector<24x64xf32>
    %cst_85 = arith.constant 0.000000e+00 : f32
    %172 = vector.broadcast %cst_85 : f32 to vector<24x64xf32>
    %173 = arith.subf %172, %152 : vector<24x64xf32>
    %174 = arith.mulf %173, %152 : vector<24x64xf32>
    %175 = math.exp %174 : vector<24x64xf32>
    %176 = arith.mulf %171, %175 : vector<24x64xf32>
    %cst_86 = arith.constant 1.000000e+00 : f32
    %177 = vector.broadcast %cst_86 : f32 to vector<24x64xf32>
    %178 = arith.subf %177, %176 : vector<24x64xf32>
    %179 = arith.mulf %151, %178 : vector<24x64xf32>
    %cst_87 = arith.constant 1.000000e+00 : f32
    %180 = vector.broadcast %cst_87 : f32 to vector<24x64xf32>
    %181 = arith.addf %180, %179 : vector<24x64xf32>
    %182 = arith.mulf %144, %181 : vector<24x64xf32>
    %c0_88 = arith.constant 0 : index
    %c0_89 = arith.constant 0 : index
    %c0_90 = arith.constant 0 : index
    %183 = vector.load %arg19[%c0_88, %c0_89, %c0_90] : memref<1x64x32xbf16, #tpu.memory_space<vmem>>, vector<1x64x32xbf16>
    %184 = vector.shape_cast %183 : vector<1x64x32xbf16> to vector<64x32xbf16>
    %185 = arith.truncf %182 : vector<24x64xf32> to vector<24x64xbf16>
    %cst_91 = arith.constant dense<0.000000e+00> : vector<24x32xf32>
    %186 = tpu.matmul %185, %184, %cst_91 {dimension_numbers = #tpu.dot_dimension_numbers<[1], [0], [0], [1], [0, 0, 1, 1], [], []>} : vector<24x64xbf16>, vector<64x32xbf16>, vector<24x32xf32> -> vector<24x32xf32>
    %187 = arith.addf %110, %186 : vector<24x32xf32>
    %c0_92 = arith.constant 0 : index
    %c0_93 = arith.constant 0 : index
    %c0_94 = arith.constant 0 : index
    %188 = vector.load %arg20[%c0_92, %c0_93, %c0_94] : memref<1x1x32xf32, #tpu.memory_space<vmem>>, vector<1x1x32xf32>
    %189 = vector.shape_cast %188 : vector<1x1x32xf32> to vector<1x32xf32>
    %190 = vector.broadcast %189 : vector<1x32xf32> to vector<24x32xf32>
    %191 = arith.addf %187, %190 : vector<24x32xf32>
    %c0_95 = arith.constant 0 : index
    %c0_96 = arith.constant 0 : index
    %192 = vector.load %arg37[%c0_95, %c0_96] : memref<24x32xf32, #tpu.memory_space<vmem>>, vector<24x32xf32>
    tpu.vector_store %arg37[%c0_95, %c0_96], %191 {strides = array<i32>} : memref<24x32xf32, #tpu.memory_space<vmem>>, vector<24x32xf32>,
    %c1_i32 = arith.constant 1 : i32
    %193 = arith.cmpi eq, %arg0, %c1_i32 : i32
    %194 = arith.extui %193 : i1 to i32
    %c0_i32_97 = arith.constant 0 : i32
    %195 = arith.cmpi ne, %194, %c0_i32_97 : i32
    scf.if %195 {
      %c0_98 = arith.constant 0 : index
      %c0_99 = arith.constant 0 : index
      %196 = vector.load %arg25[%c0_98, %c0_99] : memref<2x24xf32, #tpu.memory_space<vmem>>, vector<2x24xf32>
      %cst_100 = arith.constant dense<0.000000e+00> : vector<2x32xf32>
      %197 = tpu.matmul %196, %191, %cst_100 {dimension_numbers = #tpu.dot_dimension_numbers<[1], [0], [0], [1], [0, 0, 1, 1], [], []>} : vector<2x24xf32>, vector<24x32xf32>, vector<2x32xf32> -> vector<2x32xf32>
      %c0_101 = arith.constant 0 : index
      %c0_102 = arith.constant 0 : index
      %198 = vector.load %arg26[%c0_101, %c0_102] : memref<2x24xf32, #tpu.memory_space<vmem>>, vector<2x24xf32>
      %cst_103 = arith.constant dense<0.000000e+00> : vector<2x32xf32>
      %199 = tpu.matmul %198, %191, %cst_103 {dimension_numbers = #tpu.dot_dimension_numbers<[1], [0], [0], [1], [0, 0, 1, 1], [], []>} : vector<2x24xf32>, vector<24x32xf32>, vector<2x32xf32> -> vector<2x32xf32>
      %c0_104 = arith.constant 0 : index
      %c0_105 = arith.constant 0 : index
      %200 = vector.load %arg21[%c0_104, %c0_105] : memref<1x32xf32, #tpu.memory_space<vmem>>, vector<1x32xf32>
      %c0_106 = arith.constant 0 : index
      %c0_107 = arith.constant 0 : index
      %201 = vector.load %arg22[%c0_106, %c0_107] : memref<1x32xf32, #tpu.memory_space<vmem>>, vector<1x32xf32>
      %cst_108 = arith.constant dense<0.000000e+00> : vector<2xf32>
      %202 = vector.multi_reduction <add>, %197, %cst_108 [1] : vector<2x32xf32> to vector<2xf32>
      %203 = vector.shape_cast %202 : vector<2xf32> to vector<2x1xf32>
      %cst_109 = arith.constant 3.200000e+01 : f32
      %204 = vector.broadcast %cst_109 : f32 to vector<2x1xf32>
      %205 = arith.divf %203, %204 : vector<2x1xf32>
      %206 = vector.broadcast %205 : vector<2x1xf32> to vector<2x32xf32>
      %207 = arith.subf %197, %206 : vector<2x32xf32>
      %208 = arith.mulf %207, %207 : vector<2x32xf32>
      %cst_110 = arith.constant dense<0.000000e+00> : vector<2xf32>
      %209 = vector.multi_reduction <add>, %208, %cst_110 [1] : vector<2x32xf32> to vector<2xf32>
      %210 = vector.shape_cast %209 : vector<2xf32> to vector<2x1xf32>
      %cst_111 = arith.constant 3.200000e+01 : f32
      %211 = vector.broadcast %cst_111 : f32 to vector<2x1xf32>
      %212 = arith.divf %210, %211 : vector<2x1xf32>
      %cst_112 = arith.constant 9.99999997E-7 : f32
      %213 = vector.broadcast %cst_112 : f32 to vector<2x1xf32>
      %214 = arith.addf %212, %213 : vector<2x1xf32>
      %215 = math.rsqrt %214 : vector<2x1xf32>
      %216 = vector.broadcast %215 : vector<2x1xf32> to vector<2x32xf32>
      %217 = arith.mulf %207, %216 : vector<2x32xf32>
      %218 = vector.broadcast %200 : vector<1x32xf32> to vector<2x32xf32>
      %219 = arith.mulf %217, %218 : vector<2x32xf32>
      %220 = vector.broadcast %201 : vector<1x32xf32> to vector<2x32xf32>
      %221 = arith.addf %219, %220 : vector<2x32xf32>
      %c0_113 = arith.constant 0 : index
      %c0_114 = arith.constant 0 : index
      %222 = vector.load %arg23[%c0_113, %c0_114] : memref<32x16xbf16, #tpu.memory_space<vmem>>, vector<32x16xbf16>
      %223 = arith.truncf %221 : vector<2x32xf32> to vector<2x32xbf16>
      %cst_115 = arith.constant dense<0.000000e+00> : vector<2x16xf32>
      %224 = tpu.matmul %223, %222, %cst_115 {dimension_numbers = #tpu.dot_dimension_numbers<[1], [0], [0], [1], [0, 0, 1, 1], [], []>} : vector<2x32xbf16>, vector<32x16xbf16>, vector<2x16xf32> -> vector<2x16xf32>
      %c0_116 = arith.constant 0 : index
      %c0_117 = arith.constant 0 : index
      %225 = vector.load %arg24[%c0_116, %c0_117] : memref<1x16xf32, #tpu.memory_space<vmem>>, vector<1x16xf32>
      %226 = vector.broadcast %225 : vector<1x16xf32> to vector<2x16xf32>
      %227 = arith.addf %224, %226 : vector<2x16xf32>
      %cst_118 = arith.constant dense<0.000000e+00> : vector<2xf32>
      %228 = vector.multi_reduction <add>, %199, %cst_118 [1] : vector<2x32xf32> to vector<2xf32>
      %229 = vector.shape_cast %228 : vector<2xf32> to vector<2x1xf32>
      %cst_119 = arith.constant 3.200000e+01 : f32
      %230 = vector.broadcast %cst_119 : f32 to vector<2x1xf32>
      %231 = arith.divf %229, %230 : vector<2x1xf32>
      %232 = vector.broadcast %231 : vector<2x1xf32> to vector<2x32xf32>
      %233 = arith.subf %199, %232 : vector<2x32xf32>
      %234 = arith.mulf %233, %233 : vector<2x32xf32>
      %cst_120 = arith.constant dense<0.000000e+00> : vector<2xf32>
      %235 = vector.multi_reduction <add>, %234, %cst_120 [1] : vector<2x32xf32> to vector<2xf32>
      %236 = vector.shape_cast %235 : vector<2xf32> to vector<2x1xf32>
      %cst_121 = arith.constant 3.200000e+01 : f32
      %237 = vector.broadcast %cst_121 : f32 to vector<2x1xf32>
      %238 = arith.divf %236, %237 : vector<2x1xf32>
      %cst_122 = arith.constant 9.99999997E-7 : f32
      %239 = vector.broadcast %cst_122 : f32 to vector<2x1xf32>
      %240 = arith.addf %238, %239 : vector<2x1xf32>
      %241 = math.rsqrt %240 : vector<2x1xf32>
      %242 = vector.broadcast %241 : vector<2x1xf32> to vector<2x32xf32>
      %243 = arith.mulf %233, %242 : vector<2x32xf32>
      %244 = vector.broadcast %200 : vector<1x32xf32> to vector<2x32xf32>
      %245 = arith.mulf %243, %244 : vector<2x32xf32>
      %246 = vector.broadcast %201 : vector<1x32xf32> to vector<2x32xf32>
      %247 = arith.addf %245, %246 : vector<2x32xf32>
      %c0_123 = arith.constant 0 : index
      %c0_124 = arith.constant 0 : index
      %248 = vector.load %arg23[%c0_123, %c0_124] : memref<32x16xbf16, #tpu.memory_space<vmem>>, vector<32x16xbf16>
      %249 = arith.truncf %247 : vector<2x32xf32> to vector<2x32xbf16>
      %cst_125 = arith.constant dense<0.000000e+00> : vector<2x16xf32>
      %250 = tpu.matmul %249, %248, %cst_125 {dimension_numbers = #tpu.dot_dimension_numbers<[1], [0], [0], [1], [0, 0, 1, 1], [], []>} : vector<2x32xbf16>, vector<32x16xbf16>, vector<2x16xf32> -> vector<2x16xf32>
      %c0_126 = arith.constant 0 : index
      %c0_127 = arith.constant 0 : index
      %251 = vector.load %arg24[%c0_126, %c0_127] : memref<1x16xf32, #tpu.memory_space<vmem>>, vector<1x16xf32>
      %252 = vector.broadcast %251 : vector<1x16xf32> to vector<2x16xf32>
      %253 = arith.addf %250, %252 : vector<2x16xf32>
      %c0_128 = arith.constant 0 : index
      %c0_129 = arith.constant 0 : index
      %254 = vector.load %arg27[%c0_128, %c0_129] : memref<16x32xbf16, #tpu.memory_space<vmem>>, vector<16x32xbf16>
      %255 = arith.truncf %227 : vector<2x16xf32> to vector<2x16xbf16>
      %cst_130 = arith.constant dense<0.000000e+00> : vector<2x32xf32>
      %256 = tpu.matmul %255, %254, %cst_130 {dimension_numbers = #tpu.dot_dimension_numbers<[1], [0], [0], [1], [0, 0, 1, 1], [], []>} : vector<2x16xbf16>, vector<16x32xbf16>, vector<2x32xf32> -> vector<2x32xf32>
      %c0_131 = arith.constant 0 : index
      %c0_132 = arith.constant 0 : index
      %257 = vector.load %arg28[%c0_131, %c0_132] : memref<16x32xbf16, #tpu.memory_space<vmem>>, vector<16x32xbf16>
      %258 = arith.truncf %253 : vector<2x16xf32> to vector<2x16xbf16>
      %cst_133 = arith.constant dense<0.000000e+00> : vector<2x32xf32>
      %259 = tpu.matmul %258, %257, %cst_133 {dimension_numbers = #tpu.dot_dimension_numbers<[1], [0], [0], [1], [0, 0, 1, 1], [], []>} : vector<2x16xbf16>, vector<16x32xbf16>, vector<2x32xf32> -> vector<2x32xf32>
      %260 = arith.addf %256, %259 : vector<2x32xf32>
      %c0_134 = arith.constant 0 : index
      %c0_135 = arith.constant 0 : index
      %261 = vector.load %arg29[%c0_134, %c0_135] : memref<1x32xf32, #tpu.memory_space<vmem>>, vector<1x32xf32>
      %262 = vector.broadcast %261 : vector<1x32xf32> to vector<2x32xf32>
      %263 = arith.addf %260, %262 : vector<2x32xf32>
      %cst_136 = arith.constant 0.000000e+00 : f32
      %264 = vector.broadcast %cst_136 : f32 to vector<2x32xf32>
      %265 = arith.maximumf %263, %264 : vector<2x32xf32>
      %c0_137 = arith.constant 0 : index
      %c0_138 = arith.constant 0 : index
      %266 = vector.load %arg30[%c0_137, %c0_138] : memref<32x32xbf16, #tpu.memory_space<vmem>>, vector<32x32xbf16>
      %267 = arith.truncf %265 : vector<2x32xf32> to vector<2x32xbf16>
      %cst_139 = arith.constant dense<0.000000e+00> : vector<2x32xf32>
      %268 = tpu.matmul %267, %266, %cst_139 {dimension_numbers = #tpu.dot_dimension_numbers<[1], [0], [0], [1], [0, 0, 1, 1], [], []>} : vector<2x32xbf16>, vector<32x32xbf16>, vector<2x32xf32> -> vector<2x32xf32>
      %c0_140 = arith.constant 0 : index
      %c0_141 = arith.constant 0 : index
      %269 = vector.load %arg31[%c0_140, %c0_141] : memref<1x32xf32, #tpu.memory_space<vmem>>, vector<1x32xf32>
      %270 = vector.broadcast %269 : vector<1x32xf32> to vector<2x32xf32>
      %271 = arith.addf %268, %270 : vector<2x32xf32>
      %cst_142 = arith.constant 0.000000e+00 : f32
      %272 = vector.broadcast %cst_142 : f32 to vector<2x32xf32>
      %273 = arith.maximumf %271, %272 : vector<2x32xf32>
      %c0_143 = arith.constant 0 : index
      %c0_144 = arith.constant 0 : index
      %274 = vector.load %arg32[%c0_143, %c0_144] : memref<32x16xbf16, #tpu.memory_space<vmem>>, vector<32x16xbf16>
      %275 = arith.truncf %273 : vector<2x32xf32> to vector<2x32xbf16>
      %cst_145 = arith.constant dense<0.000000e+00> : vector<2x16xf32>
      %276 = tpu.matmul %275, %274, %cst_145 {dimension_numbers = #tpu.dot_dimension_numbers<[1], [0], [0], [1], [0, 0, 1, 1], [], []>} : vector<2x32xbf16>, vector<32x16xbf16>, vector<2x16xf32> -> vector<2x16xf32>
      %c0_146 = arith.constant 0 : index
      %c0_147 = arith.constant 0 : index
      %277 = vector.load %arg33[%c0_146, %c0_147] : memref<1x16xf32, #tpu.memory_space<vmem>>, vector<1x16xf32>
      %278 = vector.broadcast %277 : vector<1x16xf32> to vector<2x16xf32>
      %279 = arith.addf %276, %278 : vector<2x16xf32>
      %cst_148 = arith.constant 0.000000e+00 : f32
      %280 = vector.broadcast %cst_148 : f32 to vector<2x16xf32>
      %281 = arith.maximumf %279, %280 : vector<2x16xf32>
      %c0_149 = arith.constant 0 : index
      %c0_150 = arith.constant 0 : index
      %282 = vector.load %arg34[%c0_149, %c0_150] : memref<16x1xbf16, #tpu.memory_space<vmem>>, vector<16x1xbf16>
      %283 = arith.truncf %281 : vector<2x16xf32> to vector<2x16xbf16>
      %cst_151 = arith.constant dense<0.000000e+00> : vector<2x1xf32>
      %284 = tpu.matmul %283, %282, %cst_151 {dimension_numbers = #tpu.dot_dimension_numbers<[1], [0], [0], [1], [0, 0, 1, 1], [], []>} : vector<2x16xbf16>, vector<16x1xbf16>, vector<2x1xf32> -> vector<2x1xf32>
      %c0_152 = arith.constant 0 : index
      %c0_153 = arith.constant 0 : index
      %285 = vector.load %arg35[%c0_152, %c0_153] : memref<1x1xf32, #tpu.memory_space<vmem>>, vector<1x1xf32>
      %286 = vector.broadcast %285 : vector<1x1xf32> to vector<2x1xf32>
      %287 = arith.addf %284, %286 : vector<2x1xf32>
      %cst_154 = arith.constant 0.000000e+00 : f32
      %288 = vector.broadcast %cst_154 : f32 to vector<2x1xf32>
      %289 = arith.subf %288, %287 : vector<2x1xf32>
      %290 = math.exp %289 : vector<2x1xf32>
      %cst_155 = arith.constant 1.000000e+00 : f32
      %291 = vector.broadcast %cst_155 : f32 to vector<2x1xf32>
      %292 = arith.addf %291, %290 : vector<2x1xf32>
      %293 = tpu.reciprocal %292 : vector<2x1xf32> -> vector<2x1xf32>
      %c0_156 = arith.constant 0 : index
      %c0_157 = arith.constant 0 : index
      %294 = vector.load %arg36[%c0_156, %c0_157] : memref<2x1xf32, #tpu.memory_space<vmem>>, vector<2x1xf32>
      tpu.vector_store %arg36[%c0_156, %c0_157], %293 {strides = array<i32>} : memref<2x1xf32, #tpu.memory_space<vmem>>, vector<2x1xf32>,
    } else {
    }
    return
  }
  func.func @transform_0(%arg0: i32) -> (i32, i32) {
    %c0_i32 = arith.constant 0 : i32
    %c0_i32_0 = arith.constant 0 : i32
    %c0_i32_1 = arith.constant 0 : i32
    return %c0_i32, %c0_i32_0 : i32, i32
  }
  func.func @transform_1(%arg0: i32) -> (i32, i32) {
    %c0_i32 = arith.constant 0 : i32
    %c0_i32_0 = arith.constant 0 : i32
    %c0_i32_1 = arith.constant 0 : i32
    return %c0_i32, %c0_i32_0 : i32, i32
  }
  func.func @transform_2(%arg0: i32) -> (i32, i32) {
    %c0_i32 = arith.constant 0 : i32
    %c0_i32_0 = arith.constant 0 : i32
    %c0_i32_1 = arith.constant 0 : i32
    return %c0_i32, %c0_i32_0 : i32, i32
  }
  func.func @transform_3(%arg0: i32) -> (i32, i32) {
    %c0_i32 = arith.constant 0 : i32
    %c0_i32_0 = arith.constant 0 : i32
    %c0_i32_1 = arith.constant 0 : i32
    return %c0_i32, %c0_i32_0 : i32, i32
  }
  func.func @transform_4(%arg0: i32) -> (i32, i32, i32) {
    %c0_i32 = arith.constant 0 : i32
    %c0_i32_0 = arith.constant 0 : i32
    %c0_i32_1 = arith.constant 0 : i32
    return %arg0, %c0_i32, %c0_i32_0 : i32, i32, i32
  }
  func.func @transform_5(%arg0: i32) -> (i32, i32, i32) {
    %c0_i32 = arith.constant 0 : i32
    %c0_i32_0 = arith.constant 0 : i32
    %c0_i32_1 = arith.constant 0 : i32
    return %arg0, %c0_i32, %c0_i32_0 : i32, i32, i32
  }
  func.func @transform_6(%arg0: i32) -> (i32, i32, i32) {
    %c0_i32 = arith.constant 0 : i32
    %c0_i32_0 = arith.constant 0 : i32
    %c0_i32_1 = arith.constant 0 : i32
    return %arg0, %c0_i32, %c0_i32_0 : i32, i32, i32
  }
  func.func @transform_7(%arg0: i32) -> (i32, i32, i32) {
    %c0_i32 = arith.constant 0 : i32
    %c0_i32_0 = arith.constant 0 : i32
    %c0_i32_1 = arith.constant 0 : i32
    return %arg0, %c0_i32, %c0_i32_0 : i32, i32, i32
  }
  func.func @transform_8(%arg0: i32) -> (i32, i32, i32) {
    %c0_i32 = arith.constant 0 : i32
    %c0_i32_0 = arith.constant 0 : i32
    %c0_i32_1 = arith.constant 0 : i32
    return %arg0, %c0_i32, %c0_i32_0 : i32, i32, i32
  }
  func.func @transform_9(%arg0: i32) -> (i32, i32, i32) {
    %c0_i32 = arith.constant 0 : i32
    %c0_i32_0 = arith.constant 0 : i32
    %c0_i32_1 = arith.constant 0 : i32
    return %arg0, %c0_i32, %c0_i32_0 : i32, i32, i32
  }
  func.func @transform_10(%arg0: i32) -> (i32, i32, i32) {
    %c0_i32 = arith.constant 0 : i32
    %c0_i32_0 = arith.constant 0 : i32
    %c0_i32_1 = arith.constant 0 : i32
    return %arg0, %c0_i32, %c0_i32_0 : i32, i32, i32
  }
  func.func @transform_11(%arg0: i32) -> (i32, i32, i32) {
    %c0_i32 = arith.constant 0 : i32
    %c0_i32_0 = arith.constant 0 : i32
    %c0_i32_1 = arith.constant 0 : i32
    return %arg0, %c0_i32, %c0_i32_0 : i32, i32, i32
  }
  func.func @transform_12(%arg0: i32) -> (i32, i32, i32) {
    %c0_i32 = arith.constant 0 : i32
    %c0_i32_0 = arith.constant 0 : i32
    %c0_i32_1 = arith.constant 0 : i32
    return %arg0, %c0_i32, %c0_i32_0 : i32, i32, i32
  }
  func.func @transform_13(%arg0: i32) -> (i32, i32, i32) {
    %c0_i32 = arith.constant 0 : i32
    %c0_i32_0 = arith.constant 0 : i32
    %c0_i32_1 = arith.constant 0 : i32
    return %arg0, %c0_i32, %c0_i32_0 : i32, i32, i32
  }
  func.func @transform_14(%arg0: i32) -> (i32, i32, i32) {
    %c0_i32 = arith.constant 0 : i32
    %c0_i32_0 = arith.constant 0 : i32
    %c0_i32_1 = arith.constant 0 : i32
    return %arg0, %c0_i32, %c0_i32_0 : i32, i32, i32
  }
  func.func @transform_15(%arg0: i32) -> (i32, i32, i32) {
    %c0_i32 = arith.constant 0 : i32
    %c0_i32_0 = arith.constant 0 : i32
    %c0_i32_1 = arith.constant 0 : i32
    return %arg0, %c0_i32, %c0_i32_0 : i32, i32, i32
  }
  func.func @transform_16(%arg0: i32) -> (i32, i32, i32) {
    %c0_i32 = arith.constant 0 : i32
    %c0_i32_0 = arith.constant 0 : i32
    %c0_i32_1 = arith.constant 0 : i32
    return %arg0, %c0_i32, %c0_i32_0 : i32, i32, i32
  }
  func.func @transform_17(%arg0: i32) -> (i32, i32, i32) {
    %c0_i32 = arith.constant 0 : i32
    %c0_i32_0 = arith.constant 0 : i32
    %c0_i32_1 = arith.constant 0 : i32
    return %arg0, %c0_i32, %c0_i32_0 : i32, i32, i32
  }
  func.func @transform_18(%arg0: i32) -> (i32, i32, i32) {
    %c0_i32 = arith.constant 0 : i32
    %c0_i32_0 = arith.constant 0 : i32
    %c0_i32_1 = arith.constant 0 : i32
    return %arg0, %c0_i32, %c0_i32_0 : i32, i32, i32
  }
  func.func @transform_19(%arg0: i32) -> (i32, i32, i32) {
    %c0_i32 = arith.constant 0 : i32
    %c0_i32_0 = arith.constant 0 : i32
    %c0_i32_1 = arith.constant 0 : i32
    return %arg0, %c0_i32, %c0_i32_0 : i32, i32, i32
  }
  func.func @transform_20(%arg0: i32) -> (i32, i32) {
    %c0_i32 = arith.constant 0 : i32
    %c0_i32_0 = arith.constant 0 : i32
    %c0_i32_1 = arith.constant 0 : i32
    return %c0_i32, %c0_i32_0 : i32, i32
  }
  func.func @transform_21(%arg0: i32) -> (i32, i32) {
    %c0_i32 = arith.constant 0 : i32
    %c0_i32_0 = arith.constant 0 : i32
    %c0_i32_1 = arith.constant 0 : i32
    return %c0_i32, %c0_i32_0 : i32, i32
  }
  func.func @transform_22(%arg0: i32) -> (i32, i32) {
    %c0_i32 = arith.constant 0 : i32
    %c0_i32_0 = arith.constant 0 : i32
    %c0_i32_1 = arith.constant 0 : i32
    return %c0_i32, %c0_i32_0 : i32, i32
  }
  func.func @transform_23(%arg0: i32) -> (i32, i32) {
    %c0_i32 = arith.constant 0 : i32
    %c0_i32_0 = arith.constant 0 : i32
    %c0_i32_1 = arith.constant 0 : i32
    return %c0_i32, %c0_i32_0 : i32, i32
  }
  func.func @transform_24(%arg0: i32) -> (i32, i32) {
    %c0_i32 = arith.constant 0 : i32
    %c0_i32_0 = arith.constant 0 : i32
    %c0_i32_1 = arith.constant 0 : i32
    return %c0_i32, %c0_i32_0 : i32, i32
  }
  func.func @transform_25(%arg0: i32) -> (i32, i32) {
    %c0_i32 = arith.constant 0 : i32
    %c0_i32_0 = arith.constant 0 : i32
    %c0_i32_1 = arith.constant 0 : i32
    return %c0_i32, %c0_i32_0 : i32, i32
  }
  func.func @transform_26(%arg0: i32) -> (i32, i32) {
    %c0_i32 = arith.constant 0 : i32
    %c0_i32_0 = arith.constant 0 : i32
    %c0_i32_1 = arith.constant 0 : i32
    return %c0_i32, %c0_i32_0 : i32, i32
  }
  func.func @transform_27(%arg0: i32) -> (i32, i32) {
    %c0_i32 = arith.constant 0 : i32
    %c0_i32_0 = arith.constant 0 : i32
    %c0_i32_1 = arith.constant 0 : i32
    return %c0_i32, %c0_i32_0 : i32, i32
  }
  func.func @transform_28(%arg0: i32) -> (i32, i32) {
    %c0_i32 = arith.constant 0 : i32
    %c0_i32_0 = arith.constant 0 : i32
    %c0_i32_1 = arith.constant 0 : i32
    return %c0_i32, %c0_i32_0 : i32, i32
  }
  func.func @transform_29(%arg0: i32) -> (i32, i32) {
    %c0_i32 = arith.constant 0 : i32
    %c0_i32_0 = arith.constant 0 : i32
    %c0_i32_1 = arith.constant 0 : i32
    return %c0_i32, %c0_i32_0 : i32, i32
  }
  func.func @transform_30(%arg0: i32) -> (i32, i32) {
    %c0_i32 = arith.constant 0 : i32
    %c0_i32_0 = arith.constant 0 : i32
    %c0_i32_1 = arith.constant 0 : i32
    return %c0_i32, %c0_i32_0 : i32, i32
  }
  func.func @transform_31(%arg0: i32) -> (i32, i32) {
    %c0_i32 = arith.constant 0 : i32
    %c0_i32_0 = arith.constant 0 : i32
    %c0_i32_1 = arith.constant 0 : i32
    return %c0_i32, %c0_i32_0 : i32, i32
  }
  func.func @transform_32(%arg0: i32) -> (i32, i32) {
    %c0_i32 = arith.constant 0 : i32
    %c0_i32_0 = arith.constant 0 : i32
    %c0_i32_1 = arith.constant 0 : i32
    return %c0_i32, %c0_i32_0 : i32, i32
  }
  func.func @transform_33(%arg0: i32) -> (i32, i32) {
    %c0_i32 = arith.constant 0 : i32
    %c0_i32_0 = arith.constant 0 : i32
    %c0_i32_1 = arith.constant 0 : i32
    return %c0_i32, %c0_i32_0 : i32, i32
  }
  func.func @transform_34(%arg0: i32) -> (i32, i32) {
    %c0_i32 = arith.constant 0 : i32
    %c0_i32_0 = arith.constant 0 : i32
    %c0_i32_1 = arith.constant 0 : i32
    return %c0_i32, %c0_i32_0 : i32, i32
  }
  func.func @transform_35(%arg0: i32) -> (i32, i32) {
    %c0_i32 = arith.constant 0 : i32
    %c0_i32_0 = arith.constant 0 : i32
    %c0_i32_1 = arith.constant 0 : i32
    return %c0_i32, %c0_i32_0 : i32, i32
  }
}

</mosaic_0001>

<bundles_post_ra>
// kernel: tile.9
= control target key start
LH: loop header
LB: loop body
LE: loop exit
PB: predicated region body
PF: predicated region fallthrough
CT: control target
= control target key end

     0   :  { %vm3_vm0 = vcmask 261120   ;;  %s60_s0 = inlined_call_operand.vmem [shape: f32[4,5,32], index: 0, kind: input, shape index: {}]   ;;  %s61_s1 = inlined_call_operand.vmem [shape: f32[20,32], index: 1, kind: output, shape index: {}]  }
   0x1   :  { %v2_v0 = vld [vmem:[%s60_s0] sm:$0x1f]   ;;  %v20_v1 = vld [vmem:[%s60_s0 + $0x8] sm:$0x1f]   ;;  %v22_v2 = vld [vmem:[%s60_s0 + $0x10] sm:$0x1f]  }
   0x2   :  { %4 = vst.msk [vmem:[%s61_s1] sm:$0x1f] %vm3_vm0, %v2_v0   ;;  %21 = vst.msk [vmem:[%s61_s1 + $0x5] sm:$0x1f] %vm3_vm0, %v20_v1   ;;  %v24_v3 = vld [vmem:[%s60_s0 + $0x18] sm:$0x1f]  }
   0x3   :  { %23 = vst.msk [vmem:[%s61_s1 + $0xa] sm:$0x1f] %vm3_vm0, %v22_v2   ;;  %25 = vst.msk [vmem:[%s61_s1 + $0xf] sm:$0x1f] %vm3_vm0, %v24_v3  }

// kernel: siamese_forward.1
= control target key start
LH: loop header
LB: loop body
LE: loop exit
PB: predicated region body
PF: predicated region fallthrough
CT: control target
= control target key end

     0   :  { %s3824_s6 = smov 1   ;;  %s3825_s10 = smov 2   ;;  %s4354_s0 = inlined_call_operand.smem [shape: u32[36], index: -1, kind: input, shape index: {}] }
   0x1   :  { %s3872_s5 = sld [smem:[%s4354_s0]]   ;;  %s3826_s14 = smov 3  }
   0x2   :  { %s3877_s9 = sld [smem:[%s4354_s0 + %s3824_s6]]   ;;  %s3827_s18 = smov 4  }
   0x3   :  { %s3882_s13 = sld [smem:[%s4354_s0 + %s3825_s10]]   ;;  %s3828_s22 = smov 5  }
   0x4   :  { %s3887_s17 = sld [smem:[%s4354_s0 + %s3826_s14]]   ;;  %s3829_s26 = smov 6  }
   0x5   :  { %s3892_s21 = sld [smem:[%s4354_s0 + %s3827_s18]]   ;;  %s3830_s30 = smov 7  }
   0x6   :  { %s3897_s25 = sld [smem:[%s4354_s0 + %s3828_s22]]   ;;  %s3831_s4 = smov 8  }
   0x7   :  { %4363 = sst [smem:[#allocation4_spill]] %s3872_s5  ;;  %s3832_s10 = smov 9  }
   0x8   :  { %4364 = sst [smem:[#allocation5_spill]] %s3877_s9  ;;  %s3833_s15 = smov 10  }
   0x9   :  { %4365 = sst [smem:[#allocation6_spill]] %s3882_s13  ;;  %s3834_s20 = smov 11  }
   0xa   :  { %4366 = sst [smem:[#allocation7_spill]] %s3887_s17  ;;  %s3836_s1 = smov 13  }
   0xb   :  { %4367 = sst [smem:[#allocation8_spill]] %s3892_s21  ;;  %s3837_s7 = smov 14  }
   0xc   :  { %4368 = sst [smem:[#allocation9_spill]] %s3897_s25  ;;  %s3839_s22 = smov 16  }
   0xd   :  { %s3902_s29 = sld [smem:[%s4354_s0 + %s3829_s26]]   ;;  %s3835_s26 = smov 12  }
   0xe   :  { %s3907_s3 = sld [smem:[%s4354_s0 + %s3830_s30]]   ;;  %s3840_s28 = smov 17  }
   0xf   :  { %s3912_s8 = sld [smem:[%s4354_s0 + %s3831_s4]]   ;;  %s3858_s16 = smov 35  }
  0x10   :  { %s3917_s14 = sld [smem:[%s4354_s0 + %s3832_s10]]  }
  0x11   :  { %s3922_s19 = sld [smem:[%s4354_s0 + %s3833_s15]]   ;;  %s3838_s15 = smov 15  }
  0x12   :  { %s3927_s24 = sld [smem:[%s4354_s0 + %s3834_s20]]  }
  0x13   :  { %s3932_s30 = sld [smem:[%s4354_s0 + %s3835_s26]]  }
  0x14   :  { %s3937_s6 = sld [smem:[%s4354_s0 + %s3836_s1]]  }
  0x15   :  { %4369 = sst [smem:[#allocation10_spill]] %s3912_s8 }
  0x16   :  { %s3942_s12 = sld [smem:[%s4354_s0 + %s3837_s7]]   ;;  %s3841_s7 = smov 18  }
  0x17   :  { %s3947_s20 = sld [smem:[%s4354_s0 + %s3838_s15]]   ;;  %s3842_s15 = smov 19  }
  0x18   :  { %s3952_s27 = sld [smem:[%s4354_s0 + %s3839_s22]]   ;;  %s3843_s22 = smov 20  }
  0x19   :  { %s3957_s4 = sld [smem:[%s4354_s0 + %s3840_s28]]   ;;  %s3844_s28 = smov 21  }
  0x1a   :  { %s3962_s17 = sld [smem:[%s4354_s0 + %s3841_s7]]   ;;  %s3845_s7 = smov 22  }
  0x1b   :  { %s3967_s13 = sld [smem:[%s4354_s0 + %s3842_s15]]   ;;  %s3846_s15 = smov 23  }
  0x1c   :  { %s3972_s5 = sld [smem:[%s4354_s0 + %s3843_s22]]   ;;  %s3847_s22 = smov 24  }
  0x1d   :  { %s3977_s9 = sld [smem:[%s4354_s0 + %s3844_s28]]   ;;  %s3848_s28 = smov 25  }
  0x20   :  { %4370 = sst [smem:[#allocation11_spill]] %s3962_s17 }
  0x21   :  { %4371 = sst [smem:[#allocation12_spill]] %s3967_s13 }
  0x22   :  { %4372 = sst [smem:[#allocation13_spill]] %s3972_s5 }
  0x23   :  { %4373 = sst [smem:[#allocation14_spill]] %s3977_s9 }
  0x24   :  { %s3982_s17 = sld [smem:[%s4354_s0 + %s3845_s7]]   ;;  %s3849_s7 = smov 26  }
  0x25   :  { %s3987_s13 = sld [smem:[%s4354_s0 + %s3846_s15]]   ;;  %s3850_s15 = smov 27  }
  0x26   :  { %s3992_s5 = sld [smem:[%s4354_s0 + %s3847_s22]]   ;;  %s3851_s22 = smov 28  }
  0x27   :  { %s3997_s9 = sld [smem:[%s4354_s0 + %s3848_s28]]   ;;  %s3852_s28 = smov 29  }
  0x2a   :  { %4374 = sst [smem:[#allocation15_spill]] %s3982_s17 }
  0x2b   :  { %4375 = sst [smem:[#allocation16_spill]] %s3987_s13 }
  0x2c   :  { %4376 = sst [smem:[#allocation17_spill]] %s3992_s5 }
  0x2d   :  { %4377 = sst [smem:[#allocation18_spill]] %s3997_s9 }
  0x2e   :  { %s4002_s17 = sld [smem:[%s4354_s0 + %s3849_s7]]   ;;  %s3853_s7 = smov 30  }
  0x2f   :  { %s4007_s13 = sld [smem:[%s4354_s0 + %s3850_s15]]   ;;  %s3854_s15 = smov 31  }
  0x30   :  { %s4012_s5 = sld [smem:[%s4354_s0 + %s3851_s22]]   ;;  %s3855_s22 = smov 32  }
  0x31   :  { %s4017_s9 = sld [smem:[%s4354_s0 + %s3852_s28]]   ;;  %s3856_s28 = smov 33  }
  0x34   :  { %4378 = sst [smem:[#allocation19_spill]] %s4002_s17 }
  0x35   :  { %4379 = sst [smem:[#allocation20_spill]] %s4007_s13 }
  0x36   :  { %4380 = sst [smem:[#allocation21_spill]] %s4012_s5 }
  0x37   :  { %4381 = sst [smem:[#allocation22_spill]] %s4017_s9 }
  0x38   :  { %s4022_s17 = sld [smem:[%s4354_s0 + %s3853_s7]]   ;;  %s3857_s7 = smov 34  }
  0x39   :  { %s4027_s13 = sld [smem:[%s4354_s0 + %s3854_s15]]  }
  0x3a   :  { %s4032_s5 = sld [smem:[%s4354_s0 + %s3855_s22]]   ;;  %s4047_s22 = smov 0  }
  0x3b   :  { %s4037_s9 = sld [smem:[%s4354_s0 + %s3856_s28]]  }
  0x3e   :  { %4382 = sst [smem:[#allocation23_spill]] %s4022_s17 }
  0x3f   :  { %4383 = sst [smem:[#allocation24_spill]] %s4027_s13 }
  0x40   :  { %4384 = sst [smem:[#allocation25_spill]] %s4032_s5 }
  0x41   :  { %4385 = sst [smem:[#allocation26_spill]] %s4037_s9 }
  0x42   :  { %s3324_s17 = sld [smem:[%s4354_s0 + %s3857_s7]]  }
  0x43   :  { %s4045_s13 = sld [smem:[%s4354_s0 + %s3858_s16]]  }
  0x48   :  { %v76_v0 = vstv %s3324_s17 }
  0x49   :  { %4386 = sst [smem:[#allocation27_spill]] %s4045_s13  ;;  %77 = vst [vmem:[#allocation3] sm:$0x1] %v76_v0 }
  0x4a LB: > { %4387 = sst [smem:[#allocation28_spill]] %s3822_s22  ;;  %s4053_s23 = sadd.s32 4294967295, %s3822_s22   ;;  %s3822_s22 = sphi %s4047_s22, %s83_s22  }
  0x4b   : > { %p3329_p0 = scmp.ge.s32.totalorder %s3822_s22, 1  ;;  %p1100_p1 = scmp.lt.s32.totalorder %s3822_s22, 3 }
  0x4d   : > { %p1101_p2 = pnand %p3329_p0, %p1100_p1 }
  0x4e   : > { %s4390_s8 = sld [smem:[#allocation10_spill]] (!%p1101_p2)  ;;  %p1238_p3 = scmp.lt.s32.totalorder (!%p1101_p2), %s4053_s23, 1 }
  0x4f   : > { %1104 = sbr.rel (%p1101_p2) target bundleno = 4565 (0x11d5), region = 160  ;;  %s4391_s26 = sld [smem:[#allocation11_spill]] (!%p1101_p2) }
  0x50   : > { %s4392_s1 = sld [smem:[#allocation12_spill]] (!%p1101_p2)  ;;  %p3342_p4 = scmp.ne.s32.totalorder (!%p1101_p2), %s4053_s23, 0 }
  0x56   : > { %s4059_s0 = scalar_select %p1238_p3, %s4053_s23, 1 }
  0x57   : > { %s4394_s16 = sld [smem:[#allocation4_spill]] (!%p3342_p4)  ;;  %vm1343_vm0 = vcmask (!%p3342_p4), 523264   ;;  %vm1398_vm1 = vcmask (!%p3342_p4), 261120  }
  0x58   : > { %s3423_s2 = sshll.u32 %s4059_s0, 4  ;;  %s1267_s18 = scalar_lea.vmem %s3927_s24, %s4059_s0 }
  0x59   : > { %s4069_s10 = scalar_lea.vmem %s3902_s29, %s3423_s2  ;;  %s4072_s11 = scalar_lea.vmem %s4390_s8, %s3423_s2 }
  0x5a   : > { %s4077_s15 = scalar_lea.vmem %s3922_s19, %s3423_s2  ;;  %s4082_s22 = scalar_lea.vmem %s3932_s30, %s3423_s2 }
  0x5b   : > { %s1275_s13 = scalar_lea.vmem %s3937_s6, %s4059_s0  ;;  %s1278_s5 = scalar_lea.vmem %s3942_s12, %s4059_s0 }
  0x5c   : > { %s1281_s9 = scalar_lea.vmem %s3947_s20, %s4059_s0  ;;  %s4091_s17 = scalar_lea.vmem %s3952_s27, %s3423_s2 }
  0x5d   : > { %s1289_s28 = scalar_lea.vmem %s3957_s4, %s4059_s0  ;;  %s3428_s25 = sshll.u32 %s4059_s0, 5  ;;  %v1303_v4 = vld [vmem:[%s4394_s16] sm:$0xff] (!%p3342_p4)  ;;  %v1304_v5 = vld [vmem:[%s4394_s16 + $0x8] sm:$0xff] (!%p3342_p4)  ;;  %v1305_v8 = vld [vmem:[%s4394_s16 + $0x10] sm:$0xff] (!%p3342_p4) }
  0x5e   : > { %s4097_s21 = scalar_lea.vmem %s4391_s26, %s3428_s25  ;;  %s1297_s7 = scalar_lea.vmem %s4392_s1, %s4059_s0  ;;  %v1314_v6 = vpack.c.bf16 (!%p3342_p4), %v1304_v5, %v1303_v4  ;;  %v1315_v9 = vpack.c.bf16 (!%p3342_p4), %v1305_v8, %v1305_v8 }
  0x5f   : > { %1302 = sbr.rel (%p3342_p4) target bundleno = 336 (0x150), region = 164  ;;  %s4393_s8 = sld [smem:[#allocation5_spill]] (!%p3342_p4) }
  0x60   : > { %s4395_s2 = sld [smem:[#allocation6_spill]] (!%p3342_p4)  ;;  %3513 = vmatprep.mubr.msk.bf16.mxu0 (!%p3342_p4), %vm1343_vm0, %v1314_v6 }
  0x65   : > { %v3733_v1 = vld [vmem:[%s4393_s8] sm:$0xff] (!%p3342_p4)   ;;  %v3734_v2 = vld [vmem:[%s4393_s8 + $0x8] sm:$0xff] (!%p3342_p4)   ;;  %v3735_v3 = vld [vmem:[%s4393_s8 + $0x10] sm:$0xff] (!%p3342_p4)  }
  0x66   : > { %3505 = vmatprep.subr.bf16.mxu0 %v3733_v1  ;;  %v3736_v7 = vld [vmem:[%s4393_s8 + $0x18] sm:$0xff]   ;;  %v1318_v10 = vld [vmem:[%s4395_s2 + $0x10] sm:$0xff]  ;;  %v1316_v11 = vld [vmem:[%s4395_s2] sm:$0xff] }
  0x67   : > { %3506 = vmatpush3.bf16.msra.mxu0 %v3733_v1  ;;  %v1317_v15 = vld [vmem:[%s4395_s2 + $0x8] sm:$0xff] }
  0x68   : > { %3507 = vmatprep.subr.bf16.mxu0 %v3734_v2 }
  0x6b   : > { %3508 = vmatpush3.bf16.msra.mxu0 %v3734_v2 }
  0x6c   : > { %3509 = vmatprep.subr.bf16.mxu0 %v3735_v3 }
  0x6f   : > { %3510 = vmatpush3.bf16.msra.mxu0 %v3735_v3 }
  0x70   : > { %3511 = vmatprep.subr.bf16.mxu0 %v3736_v7 }
  0x73   : > { %3512 = vmatpush3.bf16.msra.mxu0 %v3736_v7 }
  0x76   : > { %3514 = vmatmul.mubr.msk.bf16.vlgmr.msra.gmra.mrb[0].mxu0 %vm1343_vm0, %v1315_v9 }
 0x149   : > { %v3515_v12 = vpop.f32.mrb[0].mxu0 }
 0x14a   : > { %v1393_v13 = vadd.f32 %v3515_v12, %v1318_v10  ;;  %v1384_v14 = vpop.f32.mrb[1].mxu0 }
 0x14b   : > { %v1385_v16 = vadd.f32 %v1384_v14, %v1316_v11  ;;  %v3516_v17 = vpop.f32.mrb[2].mxu0 }
 0x14c   : > { %1401 = vst.msk [vmem:[#allocation2 + $0x10] sm:$0xff] %vm1398_vm1, %v1393_v13  ;;  %v1387_v18 = vpop.f32.mrb[3].mxu0 }
 0x14d   : > { %1399 = vst.msk [vmem:[#allocation2] sm:$0xff] %vm1398_vm1, %v1385_v16  ;;  %v1388_v19 = vadd.f32 %v1387_v18, %v1317_v15 }
 0x14f   : > { %1400 = vst.msk [vmem:[#allocation2 + $0x8] sm:$0xff] %vm1398_vm1, %v1388_v19 }
 0x150 PF: > { %vm1407_vm2 = vcmask 261120   ;;  %v3737_v41 = vld [vmem:[%s4069_s10] sm:$0xff]   ;;  %v3739_v43 = vld [vmem:[%s4069_s10 + $0x8] sm:$0xff]   ;;  %s4396_s25 = sld [smem:[#allocation8_spill]]  ;;  %s4397_s26 = sld [smem:[#allocation9_spill]]  ;;  %vm1698_vm3 = vcmask 130048  }
 0x151   : > { %v3738_v42 = vld [vmem:[%s4077_s15] sm:$0xff]   ;;  %v3740_v44 = vld [vmem:[%s4077_s15 + $0x8] sm:$0xff]   ;;  %3517 = vmatprep.subr.bf16.mxu1 %v3737_v41  ;;  %s4400_s15 = scalar_lea.vmem %s3907_s3, %s4059_s0  ;;  %vm1803_vm4 = vcmask 1043456   ;;  %vm1759_vm5 = vcmask 195584   ;;  %vm2419_vm9 = vcmask 523264   ;;  %p3395_p5 = scmp.ne.s32.totalorder %s4053_s23, 1 }
 0x152   : > { %3533 = vmatprep.subr.bf16.mxu0 %v3738_v42  ;;  %3518 = vmatpush3.bf16.msra.mxu1 %v3737_v41  ;;  %v3741_v45 = vld [vmem:[%s4072_s11] sm:$0xff]   ;;  %v3742_v7 = vld [vmem:[%s4072_s11 + $0x8] sm:$0xff]   ;;  %s4401_s11 = scalar_lea.vmem %s3917_s14, %s4059_s0  ;;  %vm3862_vm10 = vmmov (!%p3395_p5), 0   ;;  %vm2644_vm11 = vcmask (!%p3395_p5), 254976   ;;  %s4408_s23 = sld [smem:[#allocation14_spill]] (!%p3395_p5)  ;;  %vm3111_vm12 = vcmask (!%p3395_p5), 1024  }
 0x153   : > { %v4114_v21 = vld [vmem:[#allocation2 + $0x10] sm:$0xff]  ;;  %3534 = vmatpush3.bf16.msra.mxu0 %v3738_v42  ;;  %3519 = vmatprep.subr.bf16.mxu1 %v3739_v43  ;;  %v3351_v8 = vld [vmem:[%s4400_s15] ss:$0 sm:$0xff]  ;;  %s4416_s15 = sld [smem:[#allocation26_spill]] (!%p3395_p5) }
 0x154   : > { %v4112_v20 = vld [vmem:[#allocation2] sm:$0xff]  ;;  %v1414_v24 = vsel %vm1407_vm2, %v4114_v21, 0.0  ;;  %3535 = vmatprep.subr.bf16.mxu0 %v3740_v44 }
 0x155   : > { %v1408_v23 = vsel %vm1407_vm2, %v4112_v20, 0.0  ;;  %1415 = vadd.xlane.f32.xlu1 %v1414_v24  ;;  %v3361_v11 = vld [vmem:[%s1267_s18] ss:$0 sm:$0xff]  ;;  %s3859_s18 = smov 112  }
 0x156   : > { %v4116_v22 = vld [vmem:[#allocation2 + $0x8] sm:$0xff]  ;;  %1409 = vadd.xlane.f32.xlu0 %v1408_v23  ;;  %3520 = vmatpush3.bf16.msra.mxu1 %v3739_v43  ;;  %s4398_s1 = scalar_lea.vmem %s4396_s25, %s4059_s0  ;;  %s4399_s10 = scalar_lea.vmem %s4397_s26, %s4059_s0 }
 0x157   : > { %v1411_v25 = vsel %vm1407_vm2, %v4116_v22, 0.0  ;;  %3536 = vmatpush3.bf16.msra.mxu0 %v3740_v44  ;;  %3525 = vmatprep.subr.bf16.mxu1 %v3741_v45  ;;  %v3349_v57 = vld [vmem:[%s4398_s1] ss:$0 sm:$0xff]  ;;  %s4402_s25 = sld [smem:[#allocation7_spill]]  ;;  %s4409_s0 = sld [smem:[#allocation19_spill]] (!%p3395_p5) }
 0x158   : > { %v3350_v63 = vld [vmem:[%s4399_s10] ss:$0 sm:$0xff]  ;;  %s4413_s26 = sld [smem:[#allocation21_spill]] (!%p3395_p5)  ;;  %s4414_s1 = sld [smem:[#allocation24_spill]] (!%p3395_p5) }
 0x159   : > { %s4415_s10 = sld [smem:[#allocation23_spill]] (!%p3395_p5) }
 0x15a   : > { %1412 = vadd.xlane.f32.xlu0 %v1411_v25 }
 0x1e2   : > { %v1416_v27 = vpop.xlane.xlu1 %1415 }
 0x1e3   : > { %v1410_v26 = vpop.xlane.xlu0 %1409  ;;  %v1420_v29 = vmul.f32 0.03125, %v1416_v27 }
 0x1e4   : > { %v1418_v28 = vmul.f32 0.03125, %v1410_v26 }
 0x1e5   : > { %v1423_v31 = vsub.f32 %v4114_v21, %v1420_v29  ;;  %v3356_v29 = vld [vmem:[%s4401_s11] ss:$0 sm:$0xff]  ;;  %s4417_s11 = sld [smem:[#allocation25_spill]] (!%p3395_p5) }
 0x1e6   : > { %v1421_v30 = vsub.f32 %v4112_v20, %v1418_v28 }
 0x1e7   : > { %v1413_v32 = vpop.xlane.xlu0 %1412  ;;  %v1426_v35 = vmul.f32 %v1423_v31, %v1423_v31 }
 0x1e8   : > { %v1419_v33 = vmul.f32 0.03125, %v1413_v32  ;;  %v1424_v34 = vmul.f32 %v1421_v30, %v1421_v30 }
 0x1e9   : > { %v1433_v38 = vsel %vm1407_vm2, %v1426_v35, 0.0 }
 0x1ea   : > { %v1422_v36 = vsub.f32 %v4116_v22, %v1419_v33  ;;  %v1427_v37 = vsel %vm1407_vm2, %v1424_v34, 0.0 }
 0x1eb   : > { %1428 = vadd.xlane.f32.xlu1 %v1427_v37 }
 0x1ec   : > { %v1425_v39 = vmul.f32 %v1422_v36, %v1422_v36 }
 0x1ee   : > { %v1430_v40 = vsel %vm1407_vm2, %v1425_v39, 0.0 }
 0x1ef   : > { %1434 = vadd.xlane.f32.xlu1 %v1433_v38  ;;  %1431 = vadd.xlane.f32.xlu0 %v1430_v40 }
 0x278   : > { %v1429_v46 = vpop.xlane.xlu1 %1428 }
 0x279   : > { %v1436_v47 = vmul.f32 0.03125, %v1429_v46 }
 0x27b   : > { %v1439_v48 = vadd.f32 1e-06, %v1436_v47 }
 0x27c   : > { %v1435_v49 = vpop.xlane.xlu1 %1434  ;;  %v1432_v50 = vpop.xlane.xlu0 %1431 }
 0x27d   : > { %3751 = vrsqrt.f32 %v1439_v48  ;;  %v1438_v51 = vmul.f32 0.03125, %v1435_v49  ;;  %v1437_v52 = vmul.f32 0.03125, %v1432_v50 }
 0x27f   : > { %v1441_v53 = vadd.f32 1e-06, %v1438_v51  ;;  %v1440_v54 = vadd.f32 1e-06, %v1437_v52 }
 0x281   : > { %3753 = vrsqrt.f32 %v1441_v53  ;;  %v1687_v53 = vld [vmem:[%s4402_s25] sm:$0xff] }
 0x282   : > { %3755 = vrsqrt.f32 %v1440_v54 }
 0x287   : > { %v3752_v55 = vpop.eup %3751 }
 0x288   : > { %v1445_v56 = vmul.f32 %v3752_v55, %v1421_v30  ;;  %v1689_v55 = vld [vmem:[%s4402_s25 + $0x10] sm:$0xff] }
 0x28a   : > { %v1454_v62 = vmul.f32 %v3349_v57, %v1445_v56 }
 0x28b   : > { %v3754_v58 = vpop.eup %3753 }
 0x28c   : > { %v3756_v59 = vpop.eup %3755  ;;  %v1447_v60 = vmul.f32 %v3754_v58, %v1423_v31  ;;  %v1463_v3 = vadd.f32 %v3350_v63, %v1454_v62 }
 0x28d   : > { %v1446_v61 = vmul.f32 %v3756_v59, %v1422_v36 }
 0x28e   : > { %v1456_v0 = vmul.f32 %v3349_v57, %v1447_v60 }
 0x28f   : > { %v1455_v1 = vmul.f32 %v3349_v57, %v1446_v61  ;;  %v1688_v57 = vld [vmem:[%s4402_s25 + $0x8] sm:$0xff] }
 0x290   : > { %v1465_v2 = vadd.f32 %v3350_v63, %v1456_v0 }
 0x291   : > { %v1464_v4 = vadd.f32 %v3350_v63, %v1455_v1 }
 0x292   : > { %v1471_v5 = vpack.c.bf16 %v1465_v2, %v1465_v2 }
 0x293   : > { %v1470_v6 = vpack.c.bf16 %v1464_v4, %v1463_v3 }
 0x295   : > { %3521 = vmatprep.mubr.msk.bf16.mxu1 %vm1407_vm2, %v1470_v6  ;;  %3537 = vmatprep.mubr.msk.bf16.mxu0 %vm1407_vm2, %v1470_v6 }
 0x296   : > { %3522 = vmatmul.mubr.msk.bf16.vlgmr.msra.gmra.mrb[0].mxu1 %vm1407_vm2, %v1471_v5  ;;  %3538 = vmatmul.mubr.msk.bf16.vlgmr.msra.gmra.mrb[0].mxu0 %vm1407_vm2, %v1471_v5 }
 0x297   : > { %3526 = vmatpush3.bf16.msra.mxu1 %v3741_v45  ;;  %3529 = vmatprep.mubr.msk.bf16.mxu1 %vm1407_vm2, %v1470_v6 }
 0x298   : > { %3527 = vmatprep.subr.bf16.mxu1 %v3742_v7 }
 0x29b   : > { %3528 = vmatpush3.bf16.msra.mxu1 %v3742_v7 }
 0x29e   : > { %3530 = vmatmul.mubr.msk.bf16.vlgmr.msra.gmra.mrb[4].mxu1 %vm1407_vm2, %v1471_v5 }
 0x369   : > { %v3523_v9 = vpop.f32.mrb[0].mxu1  ;;  %v3539_v10 = vpop.f32.mrb[0].mxu0 }
 0x36a   : > { %v1531_v12 = vpop.f32.mrb[1].mxu1  ;;  %v1673_v13 = vpop.f32.mrb[1].mxu0  ;;  %v1682_v19 = vadd.f32 %v3539_v10, %v3361_v11  ;;  %v1540_v36 = vadd.f32 %v3523_v9, %v3351_v8 }
 0x36b   : > { %v1532_v14 = vadd.f32 %v3351_v8, %v1531_v12  ;;  %v3524_v15 = vpop.f32.mrb[2].mxu1  ;;  %v3540_v16 = vpop.f32.mrb[2].mxu0  ;;  %v1674_v23 = vadd.f32 %v3361_v11, %v1673_v13 }
 0x36c   : > { %v1534_v17 = vpop.f32.mrb[3].mxu1  ;;  %v1676_v18 = vpop.f32.mrb[3].mxu0  ;;  %v4159_v30 = vpack.c.bf16 %v1682_v19, %v1682_v19  ;;  %v1693_v43 = vmul.f32 0.25, %v1540_v36 }
 0x36d   : > { %v1535_v24 = vadd.f32 %v3351_v8, %v1534_v17  ;;  %v1677_v25 = vadd.f32 %v3361_v11, %v1676_v18  ;;  %v1691_v26 = vmul.f32 0.25, %v1532_v14 }
 0x36e   : > { %v1805_v41 = vsel %vm1803_vm4, %v4159_v30, 0  ;;  %v1695_v45 = vpack.c.bf16 %v1693_v43, %v1693_v43 }
 0x36f   : > { %v1692_v27 = vmul.f32 0.25, %v1535_v24  ;;  %v4154_v28 = vpack.c.bf16 %v1677_v25, %v1674_v23 }
 0x371   : > { %v1694_v31 = vpack.c.bf16 %v1692_v27, %v1691_v26  ;;  %v3531_v32 = vpop.f32.mrb[4].mxu1  ;;  %3549 = vmatprep.subr.bf16.mxu0 %v4154_v28 }
 0x372   : > { %v1611_v33 = vadd.f32 %v3531_v32, %v3356_v29  ;;  %v1602_v34 = vpop.f32.mrb[5].mxu1  ;;  %3550 = vmatpush3.bf16.msra.mxu0 %v4154_v28 }
 0x373   : > { %v3532_v35 = vpop.f32.mrb[6].mxu1  ;;  %3545 = vmatprep.mubr.msk.bf16.mxu1 %vm1698_vm3, %v1694_v31  ;;  %3681 = vmatprep.subr.msk.bf16.mxu0 %vm1803_vm4, %v4159_v30  ;;  %v1603_v39 = vadd.f32 %v3356_v29, %v1602_v34 }
 0x374   : > { %v1697_v37 = vpack.c.bf16 %v1611_v33, %v1611_v33  ;;  %v1605_v38 = vpop.f32.mrb[7].mxu1 }
 0x375   : > { %v1606_v40 = vadd.f32 %v3356_v29, %v1605_v38 }
 0x376   : > { %3552 = vmatpush3.bf16.msra.mxu0 %v1805_v41  ;;  %1938 = vrot.lane.b32.xlu1 %v1697_v37, %s3859_s18  ;;  %v1709_v46 = vsel %vm1698_vm3, %v1697_v37, 0 }
 0x377   : > { %v1696_v42 = vpack.c.bf16 %v1606_v40, %v1603_v39 }
 0x379   : > { %1936 = vrot.lane.b32.xlu0 %v1696_v42, %s3859_s18  ;;  %3679 = vmatprep.subr.msk.bf16.mxu1 %vm1698_vm3, %v1696_v42  ;;  %v1706_v44 = vsel %vm1698_vm3, %v1696_v42, 0 }
 0x37a   : > { %3542 = vmatpush3.bf16.xpose.msra.mxu1 %v1706_v44  ;;  %1930 = vrot.lane.b32.xlu1 %v1694_v31, %s3859_s18 }
 0x37b   : > { %3680 = vmatprep.subr.msk.bf16.mxu1 %vm1698_vm3, %v1697_v37 }
 0x37e   : > { %1932 = vrot.lane.b32.xlu1 %v1695_v45, %s3859_s18 }
 0x382   : > { %3544 = vmatpush3.bf16.xpose.msra.mxu1 %v1709_v46 }
 0x389   : > { %3546 = vmatmul.mubr.msk.bf16.vlgmr.msra.gmra.mrb[8].mxu1 %vm1698_vm3, %v1695_v45 }
 0x3e8   : > { %v1939_v47 = vpop.permute.xlu1 %1938 }
 0x3e9   : > { %v1950_v51 = vsel %vm1698_vm3, %v1939_v47, 0 }
 0x3eb   : > { %v1937_v48 = vpop.permute.xlu0 %1936 }
 0x3ec   : > { %v1947_v49 = vsel %vm1698_vm3, %v1937_v48, 0  ;;  %3682 = vmatprep.subr.msk.bf16.mxu1 %vm1698_vm3, %v1937_v48  ;;  %v1931_v50 = vpop.permute.xlu1 %1930 }
 0x3ed   : > { %3564 = vmatpush3.bf16.xpose.msra.mxu1 %v1947_v49  ;;  %3567 = vmatprep.mubr.msk.bf16.mxu1 %vm1698_vm3, %v1931_v50 }
 0x3ee   : > { %3683 = vmatprep.subr.msk.bf16.mxu1 %vm1698_vm3, %v1939_v47 }
 0x3f0   : > { %v1933_v52 = vpop.permute.xlu1 %1932 }
 0x3f5   : > { %3566 = vmatpush3.bf16.xpose.msra.mxu1 %v1950_v51 }
 0x3fc   : > { %3568 = vmatmul.mubr.msk.bf16.vlgmr.msra.gmra.mrb[12].mxu1 %vm1698_vm3, %v1933_v52 }
 0x45c   : > { %v3547_v54 = vpop.f32.mrb[8].mxu1 }
 0x45d   : > { %v1745_v56 = vpop.f32.mrb[9].mxu1  ;;  %v1754_v61 = vadd.f32 %v3547_v54, %v1689_v55 }
 0x45e   : > { %v1746_v58 = vadd.f32 %v1745_v56, %v1687_v53  ;;  %v3548_v59 = vpop.f32.mrb[10].mxu1 }
 0x45f   : > { %v1748_v60 = vpop.f32.mrb[11].mxu1  ;;  %v1766_v1 = vsel %vm1759_vm5, %v1754_v61, -inf }
 0x460   : > { %v1749_v62 = vadd.f32 %v1748_v60, %v1688_v57  ;;  %v1760_v63 = vsel %vm1759_vm5, %v1746_v58, -inf }
 0x461   : > { %1761 = vmax.xlane.f32.xlu0 %v1760_v63 }
 0x462   : > { %v1763_v0 = vsel %vm1759_vm5, %v1749_v62, -inf }
 0x463   : > { %1764 = vmax.xlane.f32.xlu1 %v1763_v0 }
 0x465   : > { %1767 = vmax.xlane.f32.xlu0 %v1766_v1 }
 0x4cf   : > { %v3569_v2 = vpop.f32.mrb[12].mxu1 }
 0x4d0   : > { %v1986_v3 = vpop.f32.mrb[13].mxu1  ;;  %v1995_v26 = vadd.f32 %v3569_v2, %v1689_v55 }
 0x4d1   : > { %v3570_v4 = vpop.f32.mrb[14].mxu1  ;;  %v1987_v19 = vadd.f32 %v1986_v3, %v1687_v53 }
 0x4d2   : > { %v1989_v5 = vpop.f32.mrb[15].mxu1  ;;  %v2006_v31 = vsel %vm1759_vm5, %v1995_v26, -inf }
 0x4d3   : > { %v1990_v23 = vadd.f32 %v1989_v5, %v1688_v57  ;;  %v2000_v27 = vsel %vm1759_vm5, %v1987_v19, -inf }
 0x4d5   : > { %v2003_v29 = vsel %vm1759_vm5, %v1990_v23, -inf }
 0x4ee   : > { %v1762_v6 = vpop.xlane.xlu0 %1761 }
 0x4ef   : > { %v1769_v7 = vsub.f32 %v1746_v58, %v1762_v6  ;;  %v3743_v58 = vld [vmem:[%s4082_s22] sm:$0xff]  }
 0x4f0   : > { %v1765_v8 = vpop.xlane.xlu1 %1764  ;;  %3557 = vmatprep.subr.bf16.mxu0 %v3743_v58 }
 0x4f1   : > { %v1772_v9 = vmul.f32 1.442695, %v1769_v7  ;;  %v1770_v10 = vsub.f32 %v1749_v62, %v1765_v8 }
 0x4f2   : > { %v1768_v11 = vpop.xlane.xlu0 %1767 }
 0x4f3   : > { %3757 = vpow2.f32 %v1772_v9  ;;  %v1774_v12 = vmul.f32 1.442695, %v1770_v10  ;;  %v1771_v13 = vsub.f32 %v1754_v61, %v1768_v11 }
 0x4f5   : > { %3759 = vpow2.f32 %v1774_v12  ;;  %v1776_v14 = vmul.f32 1.442695, %v1771_v13  ;;  %v3744_v13 = vld [vmem:[%s4082_s22 + $0x8] sm:$0xff]   ;;  %s4407_s22 = sld [smem:[#allocation13_spill]] (!%p3395_p5) }
 0x4f7   : > { %3761 = vpow2.f32 %v1776_v14 }
 0x4fd   : > { %v3758_v15 = vpop.eup %3757 }
 0x4fe   : > { %v1778_v16 = vsel %vm1759_vm5, %v3758_v15, 0.0 }
 0x4ff   : > { %v3760_v17 = vpop.eup %3759  ;;  %1779 = vadd.xlane.f32.xlu0 %v1778_v16 }
 0x500   : > { %v1781_v24 = vsel %vm1759_vm5, %v3760_v17, 0.0 }
 0x501   : > { %v3762_v18 = vpop.eup %3761 }
 0x502   : > { %v1784_v25 = vsel %vm1759_vm5, %v3762_v18, 0.0 }
 0x503   : > { %1782 = vadd.xlane.f32.xlu0 %v1781_v24  ;;  %1785 = vadd.xlane.f32.xlu1 %v1784_v25 }
 0x507   : > { %2001 = vmax.xlane.f32.xlu0 %v2000_v27  ;;  %2004 = vmax.xlane.f32.xlu1 %v2003_v29  ;;  %v3373_v27 = vld [vmem:[%s1275_s13] ss:$0 sm:$0xff]  ;;  %s4405_s13 = sld [smem:[#allocation18_spill]] (!%p3395_p5) }
 0x50b   : > { %2007 = vmax.xlane.f32.xlu0 %v2006_v31 }
 0x58c   : > { %v1780_v32 = vpop.xlane.xlu0 %1779 }
 0x58d   : > { %3763 = vrcp.f32 %v1780_v32 }
 0x590   : > { %v1786_v33 = vpop.xlane.xlu1 %1785  ;;  %v1783_v34 = vpop.xlane.xlu0 %1782 }
 0x591   : > { %3765 = vrcp.f32 %v1786_v33 }
 0x592   : > { %3767 = vrcp.f32 %v1783_v34 }
 0x594   : > { %v2005_v35 = vpop.xlane.xlu1 %2004  ;;  %v2002_v36 = vpop.xlane.xlu0 %2001 }
 0x595   : > { %v2010_v37 = vsub.f32 %v1990_v23, %v2005_v35  ;;  %v2009_v39 = vsub.f32 %v1987_v19, %v2002_v36 }
 0x597   : > { %v2014_v38 = vmul.f32 1.442695, %v2010_v37  ;;  %v3764_v42 = vpop.eup %3763  ;;  %v2012_v44 = vmul.f32 1.442695, %v2009_v39 }
 0x598   : > { %v2008_v40 = vpop.xlane.xlu0 %2007  ;;  %v1790_v48 = vmul.f32 %v3764_v42, %v3758_v15 }
 0x599   : > { %3769 = vpow2.f32 %v2014_v38  ;;  %v2011_v41 = vsub.f32 %v1995_v26, %v2008_v40 }
 0x59b   : > { %v3766_v43 = vpop.eup %3765  ;;  %v2016_v45 = vmul.f32 1.442695, %v2011_v41 }
 0x59c   : > { %v3768_v46 = vpop.eup %3767  ;;  %v1792_v47 = vmul.f32 %v3766_v43, %v3762_v18 }
 0x59d   : > { %3771 = vpow2.f32 %v2016_v45  ;;  %v1791_v49 = vmul.f32 %v3768_v46, %v3760_v17 }
 0x59e   : > { %v1794_v50 = vpack.c.bf16 %v1792_v47, %v1792_v47  ;;  %3773 = vpow2.f32 %v2012_v44 }
 0x59f   : > { %v1793_v51 = vpack.c.bf16 %v1791_v49, %v1790_v48 }
 0x5a1   : > { %3553 = vmatprep.mubr.msk.bf16.mxu0 %vm1759_vm5, %v1793_v51 }
 0x5a2   : > { %3554 = vmatmul.mubr.msk.bf16.vlgmr.msra.gmra.mrb[4].mxu0 %vm1759_vm5, %v1794_v50 }
 0x5a3   : > { %v3770_v52 = vpop.eup %3769  ;;  %3558 = vmatpush3.bf16.msra.mxu0 %v3743_v58  ;;  %v3745_v58 = vld [vmem:[%s4091_s17] sm:$0xff]  }
 0x5a4   : > { %v2021_v53 = vsel %vm1759_vm5, %v3770_v52, 0.0  ;;  %3585 = vmatprep.subr.bf16.mxu1 %v3745_v58 }
 0x5a5   : > { %2022 = vadd.xlane.f32.xlu0 %v2021_v53  ;;  %3586 = vmatpush3.bf16.msra.mxu1 %v3745_v58 }
 0x5a7   : > { %v3772_v54 = vpop.eup %3771 }
 0x5a8   : > { %v2024_v55 = vsel %vm1759_vm5, %v3772_v54, 0.0  ;;  %v3774_v56 = vpop.eup %3773 }
 0x5a9   : > { %2025 = vadd.xlane.f32.xlu1 %v2024_v55  ;;  %v2018_v57 = vsel %vm1759_vm5, %v3774_v56, 0.0 }
 0x5ad   : > { %2019 = vadd.xlane.f32.xlu1 %v2018_v57 }
 0x5bb   : > { %2037 = vrot.lane.b32.xlu0 %v4154_v28, %s3859_s18 }
 0x5be   : > { %2039 = vrot.lane.b32.xlu1 %v4159_v30, %s3859_s18  ;;  %s4418_s18 = sld [smem:[#allocation27_spill]] (!%p3395_p5) }
 0x632   : > { %v2023_v59 = vpop.xlane.xlu0 %2022 }
 0x636   : > { %v2038_v60 = vpop.permute.xlu0 %2037  ;;  %v2026_v61 = vpop.xlane.xlu1 %2025 }
 0x637   : > { %3571 = vmatprep.subr.bf16.mxu0 %v2038_v60 }
 0x63a   : > { %v2020_v62 = vpop.xlane.xlu1 %2019 }
 0x63b   : > { %3775 = vrcp.f32 %v2020_v62 }
 0x63c   : > { %3777 = vrcp.f32 %v2023_v59  ;;  %v3746_v59 = vld [vmem:[%s4091_s17 + $0x8] sm:$0xff]   ;;  %s4410_s17 = sld [smem:[#allocation20_spill]] (!%p3395_p5) }
 0x63d   : > { %3779 = vrcp.f32 %v2026_v61  ;;  %3587 = vmatprep.subr.bf16.mxu1 %v3746_v59 }
 0x63e   : > { %v2040_v9 = vpop.permute.xlu1 %2039  ;;  %3588 = vmatpush3.bf16.msra.mxu1 %v3746_v59 }
 0x63f   : > { %v2049_v11 = vsel %vm1803_vm4, %v2040_v9, 0 }
 0x645   : > { %v3776_v63 = vpop.eup %3775 }
 0x646   : > { %v3778_v1 = vpop.eup %3777  ;;  %v2030_v4 = vmul.f32 %v3776_v63, %v3774_v56 }
 0x647   : > { %v2031_v28 = vmul.f32 %v3778_v1, %v3770_v52  ;;  %v3780_v30 = vpop.eup %3779 }
 0x648   : > { %v2032_v10 = vmul.f32 %v3780_v30, %v3772_v54 }
 0x649   : > { %v2033_v8 = vpack.c.bf16 %v2031_v28, %v2030_v4 }
 0x64a   : > { %v2034_v12 = vpack.c.bf16 %v2032_v10, %v2032_v10 }
 0x675   : > { %v3555_v0 = vpop.f32.mrb[4].mxu0 }
 0x676   : > { %v1841_v2 = vpop.f32.mrb[5].mxu0  ;;  %v1858_v7 = vpack.c.bf16 %v3555_v0, %v3555_v0 }
 0x677   : > { %v3556_v3 = vpop.f32.mrb[6].mxu0 }
 0x678   : > { %v1844_v5 = vpop.f32.mrb[7].mxu0 }
 0x679   : > { %v1857_v6 = vpack.c.bf16 %v1844_v5, %v1841_v2 }
 0x67b   : > { %3559 = vmatprep.mubr.msk.bf16.mxu0 %vm1698_vm3, %v1857_v6  ;;  %v3381_v6 = vld [vmem:[%s1278_s5] ss:$0 sm:$0xff] }
 0x67c   : > { %3560 = vmatmul.mubr.msk.bf16.vlgmr.msra.gmra.mrb[8].mxu0 %vm1698_vm3, %v1858_v7 }
 0x67d   : > { %3572 = vmatpush3.bf16.msra.mxu0 %v2038_v60  ;;  %3575 = vmatprep.mubr.msk.bf16.mxu0 %vm1759_vm5, %v2033_v8 }
 0x67e   : > { %3684 = vmatprep.subr.msk.bf16.mxu0 %vm1803_vm4, %v2040_v9  ;;  %v3382_v9 = vld [vmem:[%s1281_s9] ss:$0 sm:$0xff]  ;;  %s4404_s9 = sld [smem:[#allocation17_spill]] (!%p3395_p5) }
 0x681   : > { %3574 = vmatpush3.bf16.msra.mxu0 %v2049_v11 }
 0x682   : > { %3579 = vmatprep.subr.bf16.mxu0 %v3744_v13 }
 0x684   : > { %3576 = vmatmul.mubr.msk.bf16.vlgmr.msra.gmra.mrb[12].mxu0 %vm1759_vm5, %v2034_v12 }
 0x685   : > { %3580 = vmatpush3.bf16.msra.mxu0 %v3744_v13 }
 0x74f   : > { %v3561_v14 = vpop.f32.mrb[8].mxu0 }
 0x750   : > { %v1905_v15 = vpop.f32.mrb[9].mxu0  ;;  %v1927_v29 = vadd.f32 %v3561_v14, %v3373_v27 }
 0x751   : > { %v3562_v16 = vpop.f32.mrb[10].mxu0  ;;  %v1925_v31 = vadd.f32 %v3373_v27, %v1905_v15 }
 0x752   : > { %v1908_v17 = vpop.f32.mrb[11].mxu0 }
 0x753   : > { %v1926_v35 = vadd.f32 %v3373_v27, %v1908_v17 }
 0x757   : > { %v3577_v18 = vpop.f32.mrb[12].mxu0 }
 0x758   : > { %v2085_v19 = vpop.f32.mrb[13].mxu0  ;;  %v2102_v26 = vpack.c.bf16 %v3577_v18, %v3577_v18 }
 0x759   : > { %v3578_v23 = vpop.f32.mrb[14].mxu0 }
 0x75a   : > { %v2088_v24 = vpop.f32.mrb[15].mxu0  ;;  %v3748_v23 = vld [vmem:[%s4097_s21 + $0x8] sm:$0xff]  }
 0x75b   : > { %v2101_v25 = vpack.c.bf16 %v2088_v24, %v2085_v19  ;;  %v3747_v19 = vld [vmem:[%s4097_s21] sm:$0xff]   ;;  %v3749_v24 = vld [vmem:[%s4097_s21 + $0x10] sm:$0xff]  }
 0x75c   : > { %3593 = vmatprep.subr.bf16.mxu0 %v3747_v19 }
 0x75d   : > { %3581 = vmatprep.mubr.msk.bf16.mxu0 %vm1698_vm3, %v2101_v25  ;;  %v3750_v25 = vld [vmem:[%s4097_s21 + $0x18] sm:$0xff]   ;;  %s4406_s21 = sld [smem:[#allocation15_spill]] (!%p3395_p5) }
 0x75e   : > { %3582 = vmatmul.mubr.msk.bf16.vlgmr.msra.gmra.mrb[16].mxu0 %vm1698_vm3, %v2102_v26  ;;  %v3383_v26 = vld [vmem:[%s1289_s28] ss:$0 sm:$0xff]  ;;  %s4411_s28 = sld [smem:[#allocation16_spill]] (!%p3395_p5) }
 0x75f   : > { %3594 = vmatpush3.bf16.msra.mxu0 %v3747_v19 }
 0x760   : > { %3595 = vmatprep.subr.bf16.mxu0 %v3748_v23 }
 0x763   : > { %3596 = vmatpush3.bf16.msra.mxu0 %v3748_v23 }
 0x764   : > { %3597 = vmatprep.subr.bf16.mxu0 %v3749_v24 }
 0x767   : > { %3598 = vmatpush3.bf16.msra.mxu0 %v3749_v24 }
 0x768   : > { %3599 = vmatprep.subr.bf16.mxu0 %v3750_v25 }
 0x76b   : > { %3600 = vmatpush3.bf16.msra.mxu0 %v3750_v25 }
 0x831   : > { %v3583_v32 = vpop.f32.mrb[16].mxu0 }
 0x832   : > { %v2165_v33 = vadd.f32 %v3583_v32, %v1927_v29  ;;  %v2149_v34 = vpop.f32.mrb[17].mxu0 }
 0x833   : > { %v2163_v36 = vadd.f32 %v2149_v34, %v1925_v31  ;;  %v3584_v37 = vpop.f32.mrb[18].mxu0 }
 0x834   : > { %v2152_v38 = vpop.f32.mrb[19].mxu0  ;;  %v4226_v43 = vadd.f32 %v2165_v33, %v4114_v21 }
 0x835   : > { %v4218_v39 = vadd.f32 %v2163_v36, %v4112_v20  ;;  %v2164_v40 = vadd.f32 %v2152_v38, %v1926_v35 }
 0x836   : > { %v2177_v45 = vsel %vm1407_vm2, %v4226_v43, 0.0 }
 0x837   : > { %v4221_v41 = vadd.f32 %v2164_v40, %v4116_v22  ;;  %v2171_v42 = vsel %vm1407_vm2, %v4218_v39, 0.0 }
 0x838   : > { %2172 = vadd.xlane.f32.xlu1 %v2171_v42 }
 0x839   : > { %v2174_v44 = vsel %vm1407_vm2, %v4221_v41, 0.0 }
 0x83a   : > { %2175 = vadd.xlane.f32.xlu0 %v2174_v44 }
 0x83e   : > { %2178 = vadd.xlane.f32.xlu0 %v2177_v45 }
 0x8c5   : > { %v2173_v20 = vpop.xlane.xlu1 %2172 }
 0x8c6   : > { %v2180_v46 = vmul.f32 0.03125, %v2173_v20 }
 0x8c7   : > { %v2176_v47 = vpop.xlane.xlu0 %2175 }
 0x8c8   : > { %v2183_v22 = vsub.f32 %v4218_v39, %v2180_v46  ;;  %v2181_v48 = vmul.f32 0.03125, %v2176_v47 }
 0x8ca   : > { %v2184_v49 = vsub.f32 %v4221_v41, %v2181_v48  ;;  %v2186_v21 = vmul.f32 %v2183_v22, %v2183_v22 }
 0x8cb   : > { %v2179_v50 = vpop.xlane.xlu0 %2178 }
 0x8cc   : > { %v2182_v51 = vmul.f32 0.03125, %v2179_v50  ;;  %v2189_v52 = vsel %vm1407_vm2, %v2186_v21, 0.0  ;;  %v2187_v53 = vmul.f32 %v2184_v49, %v2184_v49 }
 0x8cd   : > { %2190 = vadd.xlane.f32.xlu1 %v2189_v52 }
 0x8ce   : > { %v2185_v54 = vsub.f32 %v4226_v43, %v2182_v51  ;;  %v2192_v55 = vsel %vm1407_vm2, %v2187_v53, 0.0 }
 0x8cf   : > { %2193 = vadd.xlane.f32.xlu0 %v2192_v55 }
 0x8d0   : > { %v2188_v56 = vmul.f32 %v2185_v54, %v2185_v54 }
 0x8d2   : > { %v2195_v57 = vsel %vm1407_vm2, %v2188_v56, 0.0 }
 0x8d3   : > { %2196 = vadd.xlane.f32.xlu1 %v2195_v57 }
 0x95a   : > { %v2191_v60 = vpop.xlane.xlu1 %2190 }
 0x95b   : > { %v2198_v61 = vmul.f32 0.03125, %v2191_v60 }
 0x95c   : > { %v2194_v62 = vpop.xlane.xlu0 %2193 }
 0x95d   : > { %v2201_v63 = vadd.f32 1e-06, %v2198_v61  ;;  %v2199_v0 = vmul.f32 0.03125, %v2194_v62 }
 0x95f   : > { %3781 = vrsqrt.f32 %v2201_v63  ;;  %v2202_v1 = vadd.f32 1e-06, %v2199_v0 }
 0x960   : > { %v2197_v2 = vpop.xlane.xlu1 %2196 }
 0x961   : > { %3783 = vrsqrt.f32 %v2202_v1  ;;  %v2200_v3 = vmul.f32 0.03125, %v2197_v2 }
 0x963   : > { %v2203_v4 = vadd.f32 1e-06, %v2200_v3 }
 0x965   : > { %3785 = vrsqrt.f32 %v2203_v4 }
 0x969   : > { %v3782_v5 = vpop.eup %3781 }
 0x96a   : > { %v2207_v28 = vmul.f32 %v3782_v5, %v2183_v22 }
 0x96b   : > { %v3784_v7 = vpop.eup %3783 }
 0x96c   : > { %v2208_v30 = vmul.f32 %v3784_v7, %v2184_v49  ;;  %v2216_v8 = vmul.f32 %v3381_v6, %v2207_v28 }
 0x96e   : > { %v2217_v10 = vmul.f32 %v3381_v6, %v2208_v30  ;;  %v2225_v13 = vadd.f32 %v3382_v9, %v2216_v8 }
 0x96f   : > { %v3786_v11 = vpop.eup %3785 }
 0x970   : > { %v2209_v12 = vmul.f32 %v3786_v11, %v2185_v54  ;;  %v2226_v14 = vadd.f32 %v3382_v9, %v2217_v10 }
 0x972   : > { %v2218_v15 = vmul.f32 %v3381_v6, %v2209_v12  ;;  %v2232_v16 = vpack.c.bf16 %v2226_v14, %v2225_v13 }
 0x974   : > { %3589 = vmatprep.mubr.msk.bf16.mxu1 %vm1407_vm2, %v2232_v16  ;;  %v2227_v17 = vadd.f32 %v3382_v9, %v2218_v15 }
 0x976   : > { %v2233_v18 = vpack.c.bf16 %v2227_v17, %v2227_v17 }
 0x978   : > { %3590 = vmatmul.mubr.msk.bf16.vlgmr.msra.gmra.mrb[16].mxu1 %vm1407_vm2, %v2233_v18 }
 0xa4b   : > { %v3591_v27 = vpop.f32.mrb[16].mxu1 }
 0xa4c   : > { %v4255_v29 = vadd.f32 %v3591_v27, %v3383_v26  ;;  %v2293_v31 = vpop.f32.mrb[17].mxu1 }
 0xa4d   : > { %v4257_v32 = vadd.f32 %v3383_v26, %v2293_v31  ;;  %v3592_v33 = vpop.f32.mrb[18].mxu1 }
 0xa4e   : > { %v4260_v34 = vmul.f32 0.70710677, %v4255_v29  ;;  %v2296_v35 = vpop.f32.mrb[19].mxu1 }
 0xa4f   : > { %v4263_v36 = vmul.f32 0.70710677, %v4257_v32  ;;  %v4265_v37 = vadd.f32 %v3383_v26, %v2296_v35  ;;  %v3860_v35 = vmov -1.0  }
 0xa50   : > { %v2321_v38 = vand.u32 2147483647, %v4260_v34  ;;  %vm2315_vm6 = vcmp.ge.f32.partialorder %v4260_v34, 0.0 }
 0xa51   : > { %v2319_v40 = vand.u32 2147483647, %v4263_v36  ;;  %v4270_v44 = vmul.f32 0.70710677, %v4265_v37  ;;  %vm2313_vm7 = vcmp.ge.f32.partialorder %v4263_v36, 0.0 }
 0xa52   : > { %v2324_v42 = vmul.f32 0.3275911, %v2321_v38  ;;  %v2360_v49 = vsub.f32 0.0, %v2321_v38 }
 0xa53   : > { %v2322_v45 = vmul.f32 0.3275911, %v2319_v40  ;;  %v2320_v46 = vand.u32 2147483647, %v4270_v44  ;;  %v2358_v21 = vsub.f32 0.0, %v2319_v40  ;;  %vm2314_vm8 = vcmp.ge.f32.partialorder %v4270_v44, 0.0 }
 0xa54   : > { %v2327_v20 = vadd.f32 1.0, %v2324_v42  ;;  %v2363_v51 = vmul.f32 %v2360_v49, %v2321_v38  ;;  %v2318_v38 = vsel %vm2315_vm6, 1.0, %v3860_v35  ;;  %v2317_v34 = vsel %vm2314_vm8, 1.0, %v3860_v35 }
 0xa55   : > { %v2325_v47 = vadd.f32 1.0, %v2322_v45  ;;  %v2323_v22 = vmul.f32 0.3275911, %v2320_v46  ;;  %v2359_v52 = vsub.f32 0.0, %v2320_v46  ;;  %v2361_v55 = vmul.f32 %v2358_v21, %v2319_v40 }
 0xa56   : > { %3787 = vrcp.f32 %v2327_v20  ;;  %v2368_v59 = vmul.f32 1.442695, %v2363_v51  ;;  %v2316_v45 = vsel %vm2313_vm7, 1.0, %v3860_v35  ;;  %v2309_v49 = vmul.f32 0.5, %v4255_v29  ;;  %v3399_v35 = vld [vmem:[%s4408_s23] ss:$0 sm:$0xff] (!%p3395_p5) }
 0xa57   : > { %3789 = vrcp.f32 %v2325_v47  ;;  %v2326_v48 = vadd.f32 1.0, %v2323_v22  ;;  %v2362_v61 = vmul.f32 %v2359_v52, %v2320_v46  ;;  %v2364_v63 = vmul.f32 1.442695, %v2361_v55 }
 0xa58   : > { %v2307_v21 = vmul.f32 0.5, %v4257_v32 }
 0xa59   : > { %3791 = vrcp.f32 %v2326_v48  ;;  %v2366_v5 = vmul.f32 1.442695, %v2362_v61 }
 0xa5a   : > { %3793 = vpow2.f32 %v2368_v59 }
 0xa5b   : > { %3795 = vpow2.f32 %v2364_v63 }
 0xa5c   : > { %3797 = vpow2.f32 %v2366_v5 }
 0xa60   : > { %v3788_v50 = vpop.eup %3787 }
 0xa61   : > { %v3790_v53 = vpop.eup %3789  ;;  %v2333_v54 = vmul.f32 1.0614054, %v3788_v50 }
 0xa62   : > { %v2331_v56 = vmul.f32 1.0614054, %v3790_v53 }
 0xa63   : > { %v2336_v57 = vadd.f32 -1.4531521, %v2333_v54  ;;  %v3792_v58 = vpop.eup %3791 }
 0xa64   : > { %v2334_v60 = vadd.f32 -1.4531521, %v2331_v56  ;;  %v2332_v0 = vmul.f32 1.0614054, %v3792_v58  ;;  %v3794_v18 = vpop.eup %3793 }
 0xa65   : > { %v2339_v62 = vmul.f32 %v3788_v50, %v2336_v57  ;;  %v3796_v23 = vpop.eup %3795  ;;  %v3394_v57 = vld [vmem:[%s1297_s7] ss:$0 sm:$0xff]  ;;  %s4412_s7 = sld [smem:[#allocation22_spill]] (!%p3395_p5) }
 0xa66   : > { %v2337_v1 = vmul.f32 %v3790_v53, %v2334_v60  ;;  %v2335_v3 = vadd.f32 -1.4531521, %v2332_v0  ;;  %v3798_v33 = vpop.eup %3797  ;;  %v3861_v0 = vmov (!%p3395_p5), 0.0|0.0  }
 0xa67   : > { %v2342_v2 = vadd.f32 1.4214138, %v2339_v62  ;;  %3673 = vmatprep.subr.bf16.mxu1 (!%p3395_p5), %v3861_v0 }
 0xa68   : > { %v2340_v4 = vadd.f32 1.4214138, %v2337_v1  ;;  %v2338_v28 = vmul.f32 %v3792_v58, %v2335_v3  ;;  %v2568_v1 = vld [vmem:[%s4405_s13] sm:$0x3] (!%p3395_p5) }
 0xa69   : > { %v2345_v6 = vmul.f32 %v3788_v50, %v2342_v2 }
 0xa6a   : > { %v2343_v7 = vmul.f32 %v3790_v53, %v2340_v4  ;;  %v2341_v8 = vadd.f32 1.4214138, %v2338_v28 }
 0xa6b   : > { %v2348_v30 = vadd.f32 -0.28449672, %v2345_v6 }
 0xa6c   : > { %v2346_v9 = vadd.f32 -0.28449672, %v2343_v7  ;;  %v2344_v11 = vmul.f32 %v3792_v58, %v2341_v8 }
 0xa6d   : > { %v2351_v10 = vmul.f32 %v3788_v50, %v2348_v30 }
 0xa6e   : > { %v2349_v12 = vmul.f32 %v3790_v53, %v2346_v9  ;;  %v2347_v14 = vadd.f32 -0.28449672, %v2344_v11 }
 0xa6f   : > { %v2354_v13 = vadd.f32 0.2548296, %v2351_v10 }
 0xa70   : > { %v2352_v15 = vadd.f32 0.2548296, %v2349_v12  ;;  %v2350_v17 = vmul.f32 %v3792_v58, %v2347_v14 }
 0xa71   : > { %v2357_v16 = vmul.f32 %v3788_v50, %v2354_v13  ;;  %v2308_v50 = vmul.f32 0.5, %v4265_v37 }
 0xa72   : > { %v2355_v19 = vmul.f32 %v3790_v53, %v2352_v15  ;;  %v2353_v25 = vadd.f32 0.2548296, %v2350_v17  ;;  %v3800_v17 = vld [vmem:[%s4406_s21 + $0x8] sm:$0xff] (!%p3395_p5)  }
 0xa73   : > { %v2372_v24 = vmul.f32 %v3794_v18, %v2357_v16  ;;  %v3799_v16 = vld [vmem:[%s4406_s21] sm:$0xff] (!%p3395_p5)  }
 0xa74   : > { %v2370_v26 = vmul.f32 %v3796_v23, %v2355_v19  ;;  %v2356_v31 = vmul.f32 %v3792_v58, %v2353_v25 }
 0xa75   : > { %v2375_v27 = vsub.f32 1.0, %v2372_v24 }
 0xa76   : > { %v2373_v40 = vsub.f32 1.0, %v2370_v26  ;;  %v2371_v20 = vmul.f32 %v3798_v33, %v2356_v31  ;;  %v3398_v31 = vld [vmem:[%s4407_s22] ss:$0 sm:$0xff] (!%p3395_p5) }
 0xa77   : > { %v2378_v42 = vmul.f32 %v2375_v27, %v2318_v38 }
 0xa78   : > { %v2376_v46 = vmul.f32 %v2373_v40, %v2316_v45  ;;  %v2374_v47 = vsub.f32 1.0, %v2371_v20 }
 0xa79   : > { %v2381_v22 = vadd.f32 1.0, %v2378_v42 }
 0xa7a   : > { %v2379_v48 = vadd.f32 1.0, %v2376_v46  ;;  %v2377_v36 = vmul.f32 %v2374_v47, %v2317_v34  ;;  %v3801_v34 = vld [vmem:[%s4409_s0] sm:$0xff] (!%p3395_p5)  }
 0xa7b   : > { %v2384_v52 = vmul.f32 %v2381_v22, %v2309_v49 }
 0xa7c   : > { %v2380_v51 = vadd.f32 1.0, %v2377_v36  ;;  %v2382_v53 = vmul.f32 %v2379_v48, %v2307_v21  ;;  %v3802_v48 = vld [vmem:[%s4410_s17] sm:$0xff] (!%p3395_p5)  }
 0xa7d   : > { %v2394_v55 = vpack.c.bf16 %v2384_v52, %v2384_v52  ;;  %v3400_v36 = vld [vmem:[%s4411_s28] ss:$0 sm:$0xff] (!%p3395_p5) }
 0xa7e   : > { %v2383_v54 = vmul.f32 %v2380_v51, %v2308_v50 }
 0xa80   : > { %v2393_v44 = vpack.c.bf16 %v2383_v54, %v2382_v53 }
 0xa82   : > { %3601 = vmatprep.mubr.msk.bf16.mxu0 %vm2419_vm9, %v2393_v44 }
 0xa83   : > { %3602 = vmatmul.mubr.msk.bf16.vlgmr.msra.gmra.mrb[20].mxu0 %vm2419_vm9, %v2394_v55 }
 0xb56   : > { %v3603_v56 = vpop.f32.mrb[20].mxu0 }
 0xb57   : > { %v2476_v58 = vadd.f32 %v3603_v56, %v4226_v43  ;;  %v2460_v59 = vpop.f32.mrb[21].mxu0 }
 0xb58   : > { %v2474_v29 = vadd.f32 %v2460_v59, %v4218_v39  ;;  %v3604_v32 = vpop.f32.mrb[22].mxu0  ;;  %2493 = sbr.rel (%p3395_p5) target bundleno = 4565 (0x11d5), region = 168  ;;  %v3863_v39 = vmov (!%p3395_p5), 0.0   ;;  %v3803_v59 = vld [vmem:[%s4412_s7] sm:$0xff] (!%p3395_p5)  }
 0xb59   : > { %v2486_v60 = vadd.f32 %v3394_v57, %v2476_v58  ;;  %v2463_v37 = vpop.f32.mrb[23].mxu0  ;;  %3611 = vmatprep.mubr.msk.f32.mxu1 (!%p3395_p5), %vm3862_vm10, %v3863_v39  ;;  %3623 = vmatprep.subr.bf16.mxu0 (!%p3395_p5), %v3863_v39 }
 0xb5a   : > { %v2484_v61 = vadd.f32 %v3394_v57, %v2474_v29  ;;  %v2475_v62 = vadd.f32 %v2463_v37, %v4221_v41  ;;  %v2494_v41 = vld [vmem:[%s4404_s9] sm:$0x3] (!%p3395_p5)  ;;  %3627 = vmatprep.mubr.msk.bf16.mxu0 (!%p3395_p5), %vm3862_vm10, %v3863_v39  ;;  %3624 = vmatpush3.bf16.msra.mxu0 (!%p3395_p5), %v3799_v16  ;;  %v3804_v29 = vld [vmem:[%s4412_s7 + $0x8] sm:$0xff] (!%p3395_p5)  }
 0xb5b   : > { %2489 = vst.msk [vmem:[#allocation2 + $0x10] sm:$0xff] %vm1407_vm2, %v2486_v60  ;;  %3625 = vmatprep.subr.bf16.mxu0 (!%p3395_p5), %v3863_v39 }
 0xb5c   : > { %2487 = vst.msk [vmem:[#allocation2] sm:$0xff] %vm1407_vm2, %v2484_v61  ;;  %v2485_v63 = vadd.f32 %v3394_v57, %v2475_v62 }
 0xb5e   : > { %2488 = vst.msk [vmem:[#allocation2 + $0x8] sm:$0xff] %vm1407_vm2, %v2485_v63  ;;  %v3674_v43 = vpack.c.bf16 (!%p3395_p5), %v2485_v63, %v2484_v61  ;;  %3626 = vmatpush3.bf16.msra.mxu0 (!%p3395_p5), %v3800_v17  ;;  %v3409_v63 = vld [vmem:[%s4413_s26] ss:$0 sm:$0xff] (!%p3395_p5) }
 0xb5f   : > { %3639 = vmatprep.subr.bf16.mxu0 %v3863_v39 }
 0xb60   : > { %3675 = vmatpush3.bf16.msra.mxu1 %v3674_v43 }
 0xb61   : > { %3609 = vmatprep.subr.mxu1 %v3863_v39 }
 0xb64   : > { %3610 = vmatpush3.msra.mxu1 %v2486_v60 }
 0xb65   : > { %3612 = vmatmul.mubr.msk.f32.vlgmr.msra.gmra.mrb[0].mxu1 %vm1759_vm5, %v2494_v41  ;;  %3676 = vmatprep.subr.bf16.mxu1 %v3861_v0 }
 0xb66   : > { %3678 = vmatpush3.bf16.msra.mxu1 %v3674_v43  ;;  %3620 = vmatprep.mubr.msk.f32.mxu1 %vm3862_vm10, %v3863_v39 }
 0xb67   : > { %3618 = vmatprep.subr.mxu1 %v3863_v39 }
 0xb6a   : > { %3619 = vmatpush3.msra.mxu1 %v2486_v60 }
 0xb6b   : > { %3621 = vmatmul.mubr.msk.f32.vlgmr.msra.gmra.mrb[2].mxu1 %vm1759_vm5, %v2568_v1  ;;  %3631 = vmatprep.subr.bf16.mxu1 %v3863_v39 }
 0xb6c   : > { %3635 = vmatprep.mubr.msk.bf16.mxu1 %vm3862_vm10, %v3863_v39  ;;  %3632 = vmatpush3.bf16.msra.mxu1 %v3799_v16 }
 0xb6d   : > { %3633 = vmatprep.subr.bf16.mxu1 %v3863_v39 }
 0xb70   : > { %3634 = vmatpush3.bf16.msra.mxu1 %v3800_v17 }
 0xb71   : > { %3645 = vmatprep.subr.bf16.mxu1 %v3863_v39 }
 0xc38   : > { %v2564_v2 = vpop.f32.mrb[0].mxu1 }
 0xc39   : > { %v3613_v3 = vpop.f32.mrb[1].mxu1  ;;  %v2645_v4 = vsel %vm2644_vm11, %v2564_v2, 0.0 }
 0xc3a   : > { %2646 = vadd.xlane.f32.xlu0 %v2645_v4 }
 0xc3e   : > { %v2638_v5 = vpop.f32.mrb[2].mxu1 }
 0xc3f   : > { %v3622_v6 = vpop.f32.mrb[3].mxu1  ;;  %v2739_v28 = vsel %vm2644_vm11, %v2638_v5, 0.0 }
 0xc40   : > { %2740 = vadd.xlane.f32.xlu0 %v2739_v28  ;;  %v3806_v6 = vld [vmem:[%s4414_s1 + $0x8] sm:$0xff]   ;;  %v3410_v28 = vld [vmem:[%s4415_s10] ss:$0 sm:$0xff] }
 0xcc7   : > { %v2647_v7 = vpop.xlane.xlu0 %2646 }
 0xcc8   : > { %v2648_v30 = vmul.f32 0.03125, %v2647_v7 }
 0xcca   : > { %v2649_v8 = vsub.f32 %v2564_v2, %v2648_v30 }
 0xccc   : > { %v2650_v9 = vmul.f32 %v2649_v8, %v2649_v8 }
 0xccd   : > { %v2741_v10 = vpop.xlane.xlu0 %2740 }
 0xcce   : > { %v2742_v11 = vmul.f32 0.03125, %v2741_v10  ;;  %v2651_v12 = vsel %vm2644_vm11, %v2650_v9, 0.0 }
 0xccf   : > { %2652 = vadd.xlane.f32.xlu1 %v2651_v12 }
 0xcd0   : > { %v2743_v13 = vsub.f32 %v2638_v5, %v2742_v11  ;;  %v3805_v5 = vld [vmem:[%s4414_s1] sm:$0xff]  }
 0xcd2   : > { %v2744_v14 = vmul.f32 %v2743_v13, %v2743_v13 }
 0xcd4   : > { %v2745_v15 = vsel %vm2644_vm11, %v2744_v14, 0.0  ;;  %v3414_v14 = vld [vmem:[%s4417_s11] ss:$0 sm:$0xff] }
 0xcd5   : > { %2746 = vadd.xlane.f32.xlu1 %v2745_v15 }
 0xd5c   : > { %v2653_v18 = vpop.xlane.xlu1 %2652 }
 0xd5d   : > { %v2654_v19 = vmul.f32 0.03125, %v2653_v18 }
 0xd5f   : > { %v2655_v23 = vadd.f32 1e-06, %v2654_v19 }
 0xd61   : > { %3808 = vrsqrt.f32 %v2655_v23 }
 0xd62   : > { %v2747_v24 = vpop.xlane.xlu1 %2746 }
 0xd63   : > { %v2748_v25 = vmul.f32 0.03125, %v2747_v24  ;;  %v3418_v24 = vld [vmem:[#allocation3] ss:$0 sm:$0xff] }
 0xd65   : > { %v2749_v26 = vadd.f32 1e-06, %v2748_v25 }
 0xd67   : > { %3810 = vrsqrt.f32 %v2749_v26 }
 0xd6b   : > { %v3809_v27 = vpop.eup %3808 }
 0xd6c   : > { %v2657_v33 = vmul.f32 %v3809_v27, %v2649_v8 }
 0xd6e   : > { %v2664_v38 = vmul.f32 %v3398_v31, %v2657_v33 }
 0xd70   : > { %v2671_v40 = vadd.f32 %v3399_v35, %v2664_v38 }
 0xd71   : > { %v3811_v42 = vpop.eup %3810 }
 0xd72   : > { %v2676_v45 = vpack.c.bf16 %v2671_v40, %v2671_v40  ;;  %v2751_v20 = vmul.f32 %v3811_v42, %v2743_v13  ;;  %v3807_v13 = vld [vmem:[%s4416_s15] sm:$0xff]  }
 0xd74   : > { %3628 = vmatmul.mubr.msk.bf16.vlgmr.msra.gmra.mrb[0].mxu0 %vm1407_vm2, %v2676_v45  ;;  %v2752_v46 = vmul.f32 %v3398_v31, %v2751_v20 }
 0xd75   : > { %3641 = vmatprep.mubr.msk.bf16.mxu0 %vm3862_vm10, %v3863_v39  ;;  %3640 = vmatpush3.bf16.msra.mxu0 %v3802_v48 }
 0xd76   : > { %v2753_v47 = vadd.f32 %v3399_v35, %v2752_v46  ;;  %3651 = vmatprep.subr.bf16.mxu0 %v3863_v39 }
 0xd78   : > { %v2754_v22 = vpack.c.bf16 %v2753_v47, %v2753_v47 }
 0xd7a   : > { %3636 = vmatmul.mubr.msk.bf16.vlgmr.msra.gmra.mrb[4].mxu1 %vm1407_vm2, %v2754_v22 }
 0xd7b   : > { %3647 = vmatprep.mubr.msk.bf16.mxu1 %vm3862_vm10, %v3863_v39  ;;  %3646 = vmatpush3.bf16.msra.mxu1 %v3801_v34 }
 0xd7c   : > { %3659 = vmatprep.subr.bf16.mxu1 %v3863_v39 }
 0xe47   : > { %v2733_v49 = vpop.f32.mrb[0].mxu0 }
 0xe48   : > { %v2734_v21 = vadd.f32 %v3400_v36, %v2733_v49  ;;  %v3629_v50 = vpop.f32.mrb[1].mxu0 }
 0xe49   : > { %v2736_v51 = vpop.f32.mrb[2].mxu0 }
 0xe4a   : > { %v2800_v52 = vpack.c.bf16 %v2734_v21, %v2734_v21  ;;  %v3630_v53 = vpop.f32.mrb[3].mxu0 }
 0xe4c   : > { %3648 = vmatmul.mubr.msk.bf16.vlgmr.msra.gmra.mrb[8].mxu1 %vm1698_vm3, %v2800_v52 }
 0xe4d   : > { %v2792_v54 = vpop.f32.mrb[4].mxu1  ;;  %3663 = vmatprep.mubr.msk.bf16.mxu1 %vm3862_vm10, %v3863_v39  ;;  %3660 = vmatpush3.bf16.msra.mxu1 %v3805_v5 }
 0xe4e   : > { %v2793_v44 = vadd.f32 %v3400_v36, %v2792_v54  ;;  %v3637_v55 = vpop.f32.mrb[5].mxu1  ;;  %3661 = vmatprep.subr.bf16.mxu1 %v3863_v39 }
 0xe4f   : > { %v2795_v56 = vpop.f32.mrb[6].mxu1 }
 0xe50   : > { %v2803_v57 = vpack.c.bf16 %v2793_v44, %v2793_v44  ;;  %v3638_v58 = vpop.f32.mrb[7].mxu1 }
 0xe51   : > { %3662 = vmatpush3.bf16.msra.mxu1 %v3806_v6 }
 0xe52   : > { %3642 = vmatmul.mubr.msk.bf16.vlgmr.msra.gmra.mrb[4].mxu0 %vm1698_vm3, %v2803_v57 }
 0xe53   : > { %3655 = vmatprep.mubr.msk.bf16.mxu0 %vm3862_vm10, %v3863_v39  ;;  %3652 = vmatpush3.bf16.msra.mxu0 %v3803_v59 }
 0xe54   : > { %3653 = vmatprep.subr.bf16.mxu0 %v3863_v39 }
 0xe57   : > { %3654 = vmatpush3.bf16.msra.mxu0 %v3804_v29 }
 0xe58   : > { %3667 = vmatprep.subr.bf16.mxu0 %v3863_v39 }
 0xf1f   : > { %v2896_v32 = vpop.f32.mrb[8].mxu1 }
 0xf20   : > { %v3649_v60 = vpop.f32.mrb[9].mxu1 }
 0xf21   : > { %v2899_v37 = vpop.f32.mrb[10].mxu1 }
 0xf22   : > { %v3650_v61 = vpop.f32.mrb[11].mxu1 }
 0xf25   : > { %v2847_v62 = vpop.f32.mrb[4].mxu0 }
 0xf26   : > { %v2897_v43 = vadd.f32 %v2896_v32, %v2847_v62  ;;  %v3643_v0 = vpop.f32.mrb[5].mxu0 }
 0xf27   : > { %v2850_v41 = vpop.f32.mrb[6].mxu0 }
 0xf28   : > { %v2909_v1 = vadd.f32 %v3409_v63, %v2897_v43  ;;  %v3644_v2 = vpop.f32.mrb[7].mxu0 }
 0xf2a   : > { %v2910_v3 = vmax.f32 %v2909_v1, 0.0 }
 0xf2c   : > { %v2915_v4 = vpack.c.bf16 %v2910_v3, %v2910_v3 }
 0xf2e   : > { %3656 = vmatmul.mubr.msk.bf16.vlgmr.msra.gmra.mrb[8].mxu0 %vm1407_vm2, %v2915_v4 }
 0xf2f   : > { %3669 = vmatprep.mubr.msk.bf16.mxu0 %vm3862_vm10, %v3863_v39  ;;  %3668 = vmatpush3.bf16.msra.mxu0 %v3807_v13 }
0x1001   : > { %v2972_v7 = vpop.f32.mrb[8].mxu0 }
0x1002   : > { %v2973_v30 = vadd.f32 %v3410_v28, %v2972_v7  ;;  %v3657_v8 = vpop.f32.mrb[9].mxu0 }
0x1003   : > { %v2975_v9 = vpop.f32.mrb[10].mxu0 }
0x1004   : > { %v2978_v10 = vmax.f32 %v2973_v30, 0.0  ;;  %v3658_v11 = vpop.f32.mrb[11].mxu0 }
0x1006   : > { %v2983_v12 = vpack.c.bf16 %v2978_v10, %v2978_v10 }
0x1008   : > { %3664 = vmatmul.mubr.msk.bf16.vlgmr.msra.gmra.mrb[12].mxu1 %vm1407_vm2, %v2983_v12 }
0x10db   : > { %v3040_v15 = vpop.f32.mrb[12].mxu1 }
0x10dc   : > { %v3041_v16 = vadd.f32 %v3414_v14, %v3040_v15  ;;  %v3665_v17 = vpop.f32.mrb[13].mxu1 }
0x10dd   : > { %v3043_v18 = vpop.f32.mrb[14].mxu1 }
0x10de   : > { %v3046_v39 = vmax.f32 %v3041_v16, 0.0  ;;  %v3666_v19 = vpop.f32.mrb[15].mxu1 }
0x10e0   : > { %v3049_v23 = vpack.c.bf16 %v3046_v39, %v3046_v39 }
0x10e2   : > { %3670 = vmatmul.mubr.msk.bf16.vlgmr.msra.gmra.mrb[12].mxu0 %vm1698_vm3, %v3049_v23 }
0x11b5   : > { %v3100_v25 = vpop.f32.mrb[12].mxu0 }
0x11b6   : > { %v3101_v26 = vadd.f32 %v3418_v24, %v3100_v25  ;;  %v3671_v27 = vpop.f32.mrb[13].mxu0 }
0x11b7   : > { %v3103_v31 = vpop.f32.mrb[14].mxu0 }
0x11b8   : > { %v3106_v33 = vsub.f32 0.0, %v3101_v26  ;;  %v3672_v35 = vpop.f32.mrb[15].mxu0 }
0x11ba   : > { %v3107_v38 = vmul.f32 1.442695, %v3106_v33 }
0x11bc   : > { %3812 = vpow2.f32 %v3107_v38 }
0x11c6   : > { %v3813_v40 = vpop.eup %3812 }
0x11c7   : > { %v3109_v42 = vadd.f32 1.0, %v3813_v40 }
0x11c9   : > { %3814 = vrcp.f32 %v3109_v42 }
0x11d3   : > { %v3815_v45 = vpop.eup %3814 }
0x11d4   : > { %3112 = vst.msk [vmem:[%s4418_s18] sm:$0x3] %vm3111_vm12, %v3815_v45 }
0x11d5 PF: > { %s4419_s5 = sld [smem:[#allocation28_spill]] }
0x11db   : > { %s83_s22 = sadd.s32 1, %s4419_s5  }
0x11dc   : > { %p80_p6 = scmp.ge.s32.totalorder %s83_s22, 4  }
0x11de   :  { %82 = sbr.rel (!%p80_p6) target bundleno = 74 (0x4a), region = 274 }

</bundles_post_ra>
